<compile_context>
chip_gen: v5e
topology: v5e:2x2
jax: 0.10.0
libtpu: 0.0.40
codegen_flags: <defaults>
</compile_context>

<pallas_src>
import jax
import jax.numpy as jnp
from jax.experimental import pallas as pl
from jax.experimental.pallas import tpu as pltpu
from typing import NamedTuple


class SpeciesEnergies(NamedTuple):
    species: jax.Array
    energies: jax.Array


# Small, forward-consistent shapes.
M, A = 8, 32            # molecules, atoms per molecule (some atoms padded with -1)
D = 64                  # AEV feature dimension (lane dim of aev blocks; NOT padded)
H1, H2 = 48, 32         # hidden widths of the per-species MLPs
S = 4                   # number of atom types (one MLP per type)
CELU_ALPHA = 0.1        # ANI uses CELU(alpha=0.1)

# TPU-friendly padded hidden sizes (weights only; tiny, resident in VMEM).
H1_PAD = 64             # per-species hidden 48 -> 64 so S*H1_PAD = 256
H2_PAD = 32             # S*H2_PAD = 128, already lane-aligned
SH1 = S * H1_PAD        # 256
SH2 = S * H2_PAD        # 128


def _celu(x, alpha=CELU_ALPHA):
    # celu(x) = max(0, x) + min(0, alpha * (exp(x/alpha) - 1)); overflow-safe form.
    neg = alpha * (jnp.exp(jnp.minimum(x, 0.0) / alpha) - 1.0)
    return jnp.where(x > 0.0, x, neg)


def ani_kernel(aev_ref, sp_ref, w1T_ref, b1T_ref, w2T_ref, b2T_ref,
               w3T_ref, b3T_ref, out_ref):
    # aev_ref: (TILE_N, D)  natural layout, f32
    # sp_ref:  (1, TILE_N)  int32 species row (-1 = padding)
    # w1T: (SH1, D)  bf16    b1T: (SH1, 1) f32
    # w2T: (SH2, SH1) bf16   b2T: (SH2, 1) f32   (block-diagonal, transposed)
    # w3T: (S,   SH2) bf16   b3T: (S, 1)   f32   (block-diagonal, transposed)
    # out_ref: (1, 1, TILE_N) per-atom energies (lane-dense store)
    t = aev_ref.shape[0]

    x = aev_ref[...].astype(jnp.bfloat16)                               # (T, D)
    # Layer 1: contract last dim of w1T with last dim of x -> (SH1, T),
    # no explicit transpose materialized ("atoms on lanes" from here on).
    h = jax.lax.dot_general(w1T_ref[...], x, (((1,), (1,)), ((), ())),
                            preferred_element_type=jnp.float32)
    h = _celu(h + b1T_ref[...]).astype(jnp.bfloat16)                    # (SH1, T)

    h = jnp.dot(w2T_ref[...], h, preferred_element_type=jnp.float32)
    h = _celu(h + b2T_ref[...]).astype(jnp.bfloat16)                    # (SH2, T)

    e = jnp.dot(w3T_ref[...], h,
                preferred_element_type=jnp.float32) + b3T_ref[...]      # (S, T)

    # Row i of `e` is MLP_i applied to every atom; pick each atom's own species.
    # One-hot built in-kernel; species == -1 matches nothing -> contributes 0.
    sp = sp_ref[...]                                                    # (1, T)
    onehot = (jax.lax.broadcasted_iota(jnp.int32, e.shape, 0)
              == sp).astype(jnp.float32)                                # (S, T)
    per_atom = jnp.sum(e * onehot, axis=0, keepdims=True)               # (1, T)
    out_ref[...] = per_atom.reshape(1, 1, t)


def prepare_params(params):
    """Pad, concatenate and block-diagonalize the per-species weights (one-time).

    Weights are cast to bf16 (MXU operands); biases stay f32.
    """
    w1, b1, w2, b2, w3, b3 = params
    w1p = jnp.zeros((S, D, H1_PAD), jnp.float32).at[:, :, :H1].set(w1)
    b1p = jnp.zeros((S, H1_PAD), jnp.float32).at[:, :H1].set(b1[:, 0, :])
    w2p = jnp.zeros((S, H1_PAD, H2_PAD), jnp.float32).at[:, :H1, :H2].set(w2)
    b2p = jnp.zeros((S, H2_PAD), jnp.float32).at[:, :H2].set(b2[:, 0, :])
    w3p = jnp.zeros((S, H2_PAD, 1), jnp.float32).at[:, :H2, :].set(w3)

    w1cat = jnp.concatenate([w1p[i] for i in range(S)], axis=1)   # (D, SH1)
    b1cat = b1p.reshape(1, SH1)
    w2blk = jnp.zeros((SH1, SH2), jnp.float32)
    w3blk = jnp.zeros((SH2, S), jnp.float32)
    for i in range(S):
        w2blk = w2blk.at[i * H1_PAD:(i + 1) * H1_PAD,
                         i * H2_PAD:(i + 1) * H2_PAD].set(w2p[i])
        w3blk = w3blk.at[i * H2_PAD:(i + 1) * H2_PAD, i].set(w3p[i, :, 0])
    b2cat = b2p.reshape(1, SH2)
    b3cat = b3[:, 0, 0].reshape(1, S)

    # Transposed ("atoms on lanes") layout used by the kernel.
    return (w1cat.T.astype(jnp.bfloat16), b1cat.T,
            w2blk.T.astype(jnp.bfloat16), b2cat.T,
            w3blk.T.astype(jnp.bfloat16), b3cat.T)


def ani_model_forward(species, aev, params, tile_n=512):
    """species: [M, A] int32, aev: [M, A, D] f32 -> SpeciesEnergies."""
    w1T, b1T, w2T, b2T, w3T, b3T = prepare_params(params)

    m, a = species.shape
    n = m * a
    # Keep >= 2 grid tiles when the atom count allows it (v7x: 2 TensorCores),
    # while letting the tile grow toward `tile_n` at larger sizes.
    tile_n = min(tile_n, max(128, pl.next_power_of_2(pl.cdiv(n, 2))))
    num_tiles = pl.cdiv(n, tile_n)
    n_pad = num_tiles * tile_n

    sp_flat = species.reshape(n).astype(jnp.int32)
    aev_flat = aev.reshape(n, D).astype(jnp.float32)
    if n_pad != n:
        sp_flat = jnp.concatenate(
            [sp_flat, jnp.full((n_pad - n,), -1, jnp.int32)])
        aev_flat = jnp.concatenate(
            [aev_flat, jnp.zeros((n_pad - n, D), jnp.float32)], axis=0)
    sp_row = sp_flat.reshape(1, n_pad)

    aev_tile = lambda t: (t, 0)
    sp_tile = lambda t: (0, t)
    whole = lambda t: (0, 0)

    out = pl.pallas_call(
        ani_kernel,
        out_shape=jax.ShapeDtypeStruct((num_tiles, 1, tile_n), jnp.float32),
        grid_spec=pltpu.PrefetchScalarGridSpec(
            num_scalar_prefetch=0,
            grid=(num_tiles,),
            in_specs=[
                pl.BlockSpec((tile_n, D), aev_tile),     # aev (natural layout)
                pl.BlockSpec((1, tile_n), sp_tile),      # species row (int32)
                pl.BlockSpec((SH1, D), whole),           # w1T (resident)
                pl.BlockSpec((SH1, 1), whole),           # b1T
                pl.BlockSpec((SH2, SH1), whole),         # w2T
                pl.BlockSpec((SH2, 1), whole),           # b2T
                pl.BlockSpec((S, SH2), whole),           # w3T
                pl.BlockSpec((S, 1), whole),             # b3T
            ],
            out_specs=pl.BlockSpec((1, 1, tile_n), lambda t: (t, 0, 0)),
        ),
        compiler_params=pltpu.CompilerParams(
            dimension_semantics=("parallel",)),
    )(aev_flat, sp_row, w1T, b1T, w2T, b2T, w3T, b3T)

    per_atom = out.reshape(n_pad)[:n]
    energies = per_atom.reshape(m, a).sum(axis=1)
    return SpeciesEnergies(species, energies)


def init_params(key):
    ks = jax.random.split(key, 6)
    w1 = jax.random.normal(ks[0], (S, D, H1), jnp.float32) / jnp.sqrt(D)
    b1 = 0.01 * jax.random.normal(ks[1], (S, 1, H1), jnp.float32)
    w2 = jax.random.normal(ks[2], (S, H1, H2), jnp.float32) / jnp.sqrt(H1)
    b2 = 0.01 * jax.random.normal(ks[3], (S, 1, H2), jnp.float32)
    w3 = jax.random.normal(ks[4], (S, H2, 1), jnp.float32) / jnp.sqrt(H2)
    b3 = 0.01 * jax.random.normal(ks[5], (S, 1, 1), jnp.float32)
    return (w1, b1, w2, b2, w3, b3)


def ref_forward(species, aev, params):
    # Pure-JAX f32 reference mirroring the PyTorch masked_scatter_ loop semantics.
    w1, b1, w2, b2, w3, b3 = params
    n = species.size
    x = aev.reshape(n, D)
    sp = species.reshape(n)
    out = jnp.zeros((n,), jnp.float32)
    for i in range(S):
        h = _celu(x @ w1[i] + b1[i])
        h = _celu(h @ w2[i] + b2[i])
        e = (h @ w3[i] + b3[i])[:, 0]
        out = jnp.where(sp == i, e, out)    # species==-1 atoms stay 0
    return out.reshape(species.shape).sum(axis=1)


if __name__ == "__main__":
    key = jax.random.PRNGKey(0)
    k_sp, k_aev, k_par = jax.random.split(key, 3)

    species = jax.random.randint(k_sp, (M, A), 0, S, dtype=jnp.int32)
    species = species.at[1, A - 5:].set(-1)      # padded atoms in molecule 1
    species = species.at[5, A - 9:].set(-1)      # padded atoms in molecule 5
    aev = jax.random.normal(k_aev, (M, A, D), jnp.float32)
    params = init_params(k_par)

    fwd = jax.jit(ani_model_forward)
    result = fwd(species, aev, params)
    jax.block_until_ready(result.energies)

    ref = ref_forward(species, aev, params)
    assert result.species.shape == (M, A)
    assert result.energies.shape == (M,)
    # bf16 MXU operands (f32 accumulation / f32 CELU) vs f32 reference:
    # loosened tolerance per the review; gross errors would be O(1) per atom.
    assert jnp.allclose(result.energies, ref, rtol=5e-2, atol=2e-1), (
        result.energies, ref)
    print("KERNEL_OK")
</pallas_src>

<mosaic_0001>
module attributes {stable_mosaic.version = 11 : i64} {
  func.func @ani_kernel(%arg0: i32, %arg1: memref<128x64xf32, #tpu.memory_space<vmem>>, %arg2: memref<1x128xi32, #tpu.memory_space<vmem>>, %arg3: memref<256x64xbf16, #tpu.memory_space<vmem>>, %arg4: memref<256x1xf32, #tpu.memory_space<vmem>>, %arg5: memref<128x256xbf16, #tpu.memory_space<vmem>>, %arg6: memref<128x1xf32, #tpu.memory_space<vmem>>, %arg7: memref<4x128xbf16, #tpu.memory_space<vmem>>, %arg8: memref<4x1xf32, #tpu.memory_space<vmem>>, %arg9: memref<1x1x128xf32, #tpu.memory_space<vmem>>) attributes {dimension_semantics = [#tpu.dimension_semantics<parallel>], iteration_bounds = array<i64: 2>, scalar_prefetch = 0 : i64, scratch_operands = 0 : i64, tpu.core_type = #tpu.core_type<tc>, window_params = [{transform_indices = @transform_0, window_bounds = array<i64: 128, 64>}, {transform_indices = @transform_1, window_bounds = array<i64: 1, 128>}, {pipeline_mode = #tpu.pipeline_mode<synchronous>, transform_indices = @transform_2, window_bounds = array<i64: 256, 64>}, {pipeline_mode = #tpu.pipeline_mode<synchronous>, transform_indices = @transform_3, window_bounds = array<i64: 256, 1>}, {pipeline_mode = #tpu.pipeline_mode<synchronous>, transform_indices = @transform_4, window_bounds = array<i64: 128, 256>}, {pipeline_mode = #tpu.pipeline_mode<synchronous>, transform_indices = @transform_5, window_bounds = array<i64: 128, 1>}, {pipeline_mode = #tpu.pipeline_mode<synchronous>, transform_indices = @transform_6, window_bounds = array<i64: 4, 128>}, {pipeline_mode = #tpu.pipeline_mode<synchronous>, transform_indices = @transform_7, window_bounds = array<i64: 4, 1>}, {transform_indices = @transform_8, window_bounds = array<i64: 1, 1, 128>}]} {
    %c0 = arith.constant 0 : index
    %c0_0 = arith.constant 0 : index
    %0 = vector.load %arg1[%c0, %c0_0] : memref<128x64xf32, #tpu.memory_space<vmem>>, vector<128x64xf32>
    %1 = arith.truncf %0 : vector<128x64xf32> to vector<128x64xbf16>
    %c0_1 = arith.constant 0 : index
    %c0_2 = arith.constant 0 : index
    %2 = vector.load %arg3[%c0_1, %c0_2] : memref<256x64xbf16, #tpu.memory_space<vmem>>, vector<256x64xbf16>
    %cst = arith.constant dense<0.000000e+00> : vector<256x128xf32>
    %3 = tpu.matmul %2, %1, %cst {dimension_numbers = #tpu.dot_dimension_numbers<[1], [1], [0], [0], [0, 0, 1, 0], [], []>} : vector<256x64xbf16>, vector<128x64xbf16>, vector<256x128xf32> -> vector<256x128xf32>
    %c0_3 = arith.constant 0 : index
    %c0_4 = arith.constant 0 : index
    %4 = vector.load %arg4[%c0_3, %c0_4] : memref<256x1xf32, #tpu.memory_space<vmem>>, vector<256x1xf32>
    %5 = vector.broadcast %4 : vector<256x1xf32> to vector<256x128xf32>
    %6 = arith.addf %3, %5 : vector<256x128xf32>
    %cst_5 = arith.constant 0.000000e+00 : f32
    %7 = vector.broadcast %cst_5 : f32 to vector<256x128xf32>
    %8 = arith.minimumf %6, %7 : vector<256x128xf32>
    %cst_6 = arith.constant 1.000000e-01 : f32
    %9 = vector.broadcast %cst_6 : f32 to vector<256x128xf32>
    %10 = arith.divf %8, %9 : vector<256x128xf32>
    %11 = math.exp %10 : vector<256x128xf32>
    %cst_7 = arith.constant 1.000000e+00 : f32
    %12 = vector.broadcast %cst_7 : f32 to vector<256x128xf32>
    %13 = arith.subf %11, %12 : vector<256x128xf32>
    %cst_8 = arith.constant 1.000000e-01 : f32
    %14 = vector.broadcast %cst_8 : f32 to vector<256x128xf32>
    %15 = arith.mulf %14, %13 : vector<256x128xf32>
    %cst_9 = arith.constant 0.000000e+00 : f32
    %16 = vector.broadcast %cst_9 : f32 to vector<256x128xf32>
    %17 = arith.cmpf ogt, %6, %16 : vector<256x128xf32>
    %18 = arith.select %17, %6, %15 : vector<256x128xi1>, vector<256x128xf32>
    %19 = arith.truncf %18 : vector<256x128xf32> to vector<256x128xbf16>
    %c0_10 = arith.constant 0 : index
    %c0_11 = arith.constant 0 : index
    %20 = vector.load %arg5[%c0_10, %c0_11] : memref<128x256xbf16, #tpu.memory_space<vmem>>, vector<128x256xbf16>
    %cst_12 = arith.constant dense<0.000000e+00> : vector<128x128xf32>
    %21 = tpu.matmul %20, %19, %cst_12 {dimension_numbers = #tpu.dot_dimension_numbers<[1], [0], [0], [1], [0, 0, 1, 1], [], []>} : vector<128x256xbf16>, vector<256x128xbf16>, vector<128x128xf32> -> vector<128x128xf32>
    %c0_13 = arith.constant 0 : index
    %c0_14 = arith.constant 0 : index
    %22 = vector.load %arg6[%c0_13, %c0_14] : memref<128x1xf32, #tpu.memory_space<vmem>>, vector<128x1xf32>
    %23 = vector.broadcast %22 : vector<128x1xf32> to vector<128x128xf32>
    %24 = arith.addf %21, %23 : vector<128x128xf32>
    %cst_15 = arith.constant 0.000000e+00 : f32
    %25 = vector.broadcast %cst_15 : f32 to vector<128x128xf32>
    %26 = arith.minimumf %24, %25 : vector<128x128xf32>
    %cst_16 = arith.constant 1.000000e-01 : f32
    %27 = vector.broadcast %cst_16 : f32 to vector<128x128xf32>
    %28 = arith.divf %26, %27 : vector<128x128xf32>
    %29 = math.exp %28 : vector<128x128xf32>
    %cst_17 = arith.constant 1.000000e+00 : f32
    %30 = vector.broadcast %cst_17 : f32 to vector<128x128xf32>
    %31 = arith.subf %29, %30 : vector<128x128xf32>
    %cst_18 = arith.constant 1.000000e-01 : f32
    %32 = vector.broadcast %cst_18 : f32 to vector<128x128xf32>
    %33 = arith.mulf %32, %31 : vector<128x128xf32>
    %cst_19 = arith.constant 0.000000e+00 : f32
    %34 = vector.broadcast %cst_19 : f32 to vector<128x128xf32>
    %35 = arith.cmpf ogt, %24, %34 : vector<128x128xf32>
    %36 = arith.select %35, %24, %33 : vector<128x128xi1>, vector<128x128xf32>
    %37 = arith.truncf %36 : vector<128x128xf32> to vector<128x128xbf16>
    %c0_20 = arith.constant 0 : index
    %c0_21 = arith.constant 0 : index
    %38 = vector.load %arg7[%c0_20, %c0_21] : memref<4x128xbf16, #tpu.memory_space<vmem>>, vector<4x128xbf16>
    %cst_22 = arith.constant dense<0.000000e+00> : vector<4x128xf32>
    %39 = tpu.matmul %38, %37, %cst_22 {dimension_numbers = #tpu.dot_dimension_numbers<[1], [0], [0], [1], [0, 0, 1, 1], [], []>} : vector<4x128xbf16>, vector<128x128xbf16>, vector<4x128xf32> -> vector<4x128xf32>
    %c0_23 = arith.constant 0 : index
    %c0_24 = arith.constant 0 : index
    %40 = vector.load %arg8[%c0_23, %c0_24] : memref<4x1xf32, #tpu.memory_space<vmem>>, vector<4x1xf32>
    %41 = vector.broadcast %40 : vector<4x1xf32> to vector<4x128xf32>
    %42 = arith.addf %39, %41 : vector<4x128xf32>
    %c0_25 = arith.constant 0 : index
    %c0_26 = arith.constant 0 : index
    %43 = vector.load %arg2[%c0_25, %c0_26] : memref<1x128xi32, #tpu.memory_space<vmem>>, vector<1x128xi32>
    %44 = tpu.iota {dimensions = array<i32: 0>} : vector<4x128xi32>
    %45 = vector.broadcast %43 : vector<1x128xi32> to vector<4x128xi32>
    %46 = arith.cmpi eq, %44, %45 : vector<4x128xi32>
    %47 = arith.extui %46 : vector<4x128xi1> to vector<4x128xi32>
    %48 = arith.sitofp %47 : vector<4x128xi32> to vector<4x128xf32>
    %49 = arith.mulf %42, %48 : vector<4x128xf32>
    %cst_27 = arith.constant dense<0.000000e+00> : vector<128xf32>
    %50 = vector.multi_reduction <add>, %49, %cst_27 [0] : vector<4x128xf32> to vector<128xf32>
    %51 = vector.shape_cast %50 : vector<128xf32> to vector<1x128xf32>
    %52 = vector.shape_cast %51 : vector<1x128xf32> to vector<1x1x128xf32>
    %c0_28 = arith.constant 0 : index
    %c0_29 = arith.constant 0 : index
    %c0_30 = arith.constant 0 : index
    %53 = vector.load %arg9[%c0_28, %c0_29, %c0_30] : memref<1x1x128xf32, #tpu.memory_space<vmem>>, vector<1x1x128xf32>
    tpu.vector_store %arg9[%c0_28, %c0_29, %c0_30], %52 {strides = array<i32>} : memref<1x1x128xf32, #tpu.memory_space<vmem>>, vector<1x1x128xf32>,
    return
  }
  func.func @transform_0(%arg0: i32) -> (i32, i32) {
    %c0_i32 = arith.constant 0 : i32
    %c0_i32_0 = arith.constant 0 : i32
    return %arg0, %c0_i32 : i32, i32
  }
  func.func @transform_1(%arg0: i32) -> (i32, i32) {
    %c0_i32 = arith.constant 0 : i32
    %c0_i32_0 = arith.constant 0 : i32
    return %c0_i32, %arg0 : i32, i32
  }
  func.func @transform_2(%arg0: i32) -> (i32, i32) {
    %c0_i32 = arith.constant 0 : i32
    %c0_i32_0 = arith.constant 0 : i32
    %c0_i32_1 = arith.constant 0 : i32
    return %c0_i32, %c0_i32_0 : i32, i32
  }
  func.func @transform_3(%arg0: i32) -> (i32, i32) {
    %c0_i32 = arith.constant 0 : i32
    %c0_i32_0 = arith.constant 0 : i32
    %c0_i32_1 = arith.constant 0 : i32
    return %c0_i32, %c0_i32_0 : i32, i32
  }
  func.func @transform_4(%arg0: i32) -> (i32, i32) {
    %c0_i32 = arith.constant 0 : i32
    %c0_i32_0 = arith.constant 0 : i32
    %c0_i32_1 = arith.constant 0 : i32
    return %c0_i32, %c0_i32_0 : i32, i32
  }
  func.func @transform_5(%arg0: i32) -> (i32, i32) {
    %c0_i32 = arith.constant 0 : i32
    %c0_i32_0 = arith.constant 0 : i32
    %c0_i32_1 = arith.constant 0 : i32
    return %c0_i32, %c0_i32_0 : i32, i32
  }
  func.func @transform_6(%arg0: i32) -> (i32, i32) {
    %c0_i32 = arith.constant 0 : i32
    %c0_i32_0 = arith.constant 0 : i32
    %c0_i32_1 = arith.constant 0 : i32
    return %c0_i32, %c0_i32_0 : i32, i32
  }
  func.func @transform_7(%arg0: i32) -> (i32, i32) {
    %c0_i32 = arith.constant 0 : i32
    %c0_i32_0 = arith.constant 0 : i32
    %c0_i32_1 = arith.constant 0 : i32
    return %c0_i32, %c0_i32_0 : i32, i32
  }
  func.func @transform_8(%arg0: i32) -> (i32, i32, i32) {
    %c0_i32 = arith.constant 0 : i32
    %c0_i32_0 = arith.constant 0 : i32
    %c0_i32_1 = arith.constant 0 : i32
    return %arg0, %c0_i32, %c0_i32_0 : i32, i32, i32
  }
}

</mosaic_0001>

<bundles_post_ra>
// kernel: ani_model_forward.1
= control target key start
LH: loop header
LB: loop body
LE: loop exit
PB: predicated region body
PF: predicated region fallthrough
CT: control target
= control target key end

     0   :  { %s2017_s27 = smov 0   ;;  %s2790_s0 = inlined_call_operand.vmem [shape: f32[256,64], index: 0, kind: input, shape index: {}]   ;;  %s2791_s1 = inlined_call_operand.vmem [shape: s32[1,256], index: 1, kind: input, shape index: {}]   ;;  %s2792_s2 = inlined_call_operand.vmem [shape: bf16[256,64], index: 2, kind: input, shape index: {}]   ;;  %s2793_s3 = inlined_call_operand.vmem [shape: f32[256,1], index: 3, kind: input, shape index: {}]   ;;  %s2794_s4 = inlined_call_operand.vmem [shape: bf16[128,256], index: 4, kind: input, shape index: {}]   ;;  %s2795_s5 = inlined_call_operand.vmem [shape: f32[128,1], index: 5, kind: input, shape index: {}]   ;;  %s2796_s6 = inlined_call_operand.vmem [shape: bf16[4,128], index: 6, kind: input, shape index: {}]   ;;  %s2797_s7 = inlined_call_operand.vmem [shape: f32[4,1], index: 7, kind: input, shape index: {}]   ;;  %s2798_s8 = inlined_call_operand.vmem [shape: f32[2,1,128], index: 8, kind: output, shape index: {}]  }
   0x1 LB: > { %s2023_s28 = sadd.s32 4294967295, %s1967_s27   ;;  %p1610_p0 = scmp.ge.s32.totalorder %s1967_s27, 1  ;;  %s1967_s27 = sphi %s2017_s27, %s18_s27  }
   0x2   : > { %p271_p1 = scmp.lt.s32.totalorder %s1967_s27, 3 }
   0x4   : > { %p272_p2 = pnand %p1610_p0, %p271_p1 }
   0x5   : > { %s1611_s9 = sshll.u32 (!%p272_p2), %s2023_s28, 4  ;;  %p312_p4 = scmp.lt.s32.totalorder (!%p272_p2), %s2023_s28, 1 }
   0x6   : > { %275 = sbr.rel (%p272_p2) target bundleno = 835 (0x343), region = 52  ;;  %p307_p3 = scmp.lt.s32.totalorder (!%p272_p2), %s1611_s9, 31 }
   0xb   : > { %v404_v0 = vld [vmem:[%s2793_s3 + $0xf0] sm:$0xff]  ;;  %v1969_v2 = vmov 0   ;;  %s2803_s9 = smov (!%p307_p3, %s1611_s9), 31  ;;  %v405_v3 = vld [vmem:[%s2793_s3 + $0xf8] sm:$0xff]  ;;  %vm646_vm0 = vcmask 523264   ;;  %v402_v11 = vld [vmem:[%s2793_s3 + $0xe0] sm:$0xff] }
   0xc   : > { %v388_v1 = vld [vmem:[%s2793_s3 + $0x70] sm:$0xff]  ;;  %1859 = vset.pattern.permute.xlu0 %v1969_v2  ;;  %1860 = vset.pattern.permute.xlu1 %v1969_v2  ;;  %s1612_s12 = sshll.u32 %s2803_s9, 3  ;;  %v389_v6 = vld [vmem:[%s2793_s3 + $0x78] sm:$0xff]  ;;  %v386_v13 = vld [vmem:[%s2793_s3 + $0x60] sm:$0xff]  ;;  %s2805_s28 = smov (!%p312_p4, %s2023_s28), 1 }
   0xd   : > { %558 = vperm.xlu0 %1859, %v404_v0   ;;  %478 = vperm.xlu1 %1860, %v388_v1   ;;  %s2037_s15 = scalar_lea.vmem %s2790_s0, %s1612_s12  ;;  %v387_v14 = vld [vmem:[%s2793_s3 + $0x68] sm:$0xff]  ;;  %v401_v20 = vld [vmem:[%s2793_s3 + $0xd8] sm:$0xff]  ;;  %v384_v21 = vld [vmem:[%s2793_s3 + $0x50] sm:$0xff]  ;;  %s314_s9 = scalar_lea.vmem %s2791_s1, %s2805_s28 }
   0xe   : > { %1861 = vset.pattern.permute.xlu2 %v1969_v2  ;;  %v332_v4 = vld [vmem:[%s2037_s15 + $0x70] sm:$0xff]  ;;  %v333_v5 = vld [vmem:[%s2037_s15 + $0x78] sm:$0xff]  ;;  %v330_v8 = vld [vmem:[%s2037_s15 + $0x60] sm:$0xff]  ;;  %s317_s17 = scalar_lea.vmem %s2798_s8, %s2805_s28 }
   0xf   : > { %v341_v7 = vpack.c.bf16 %v333_v5, %v332_v4  ;;  %v331_v9 = vld [vmem:[%s2037_s15 + $0x68] sm:$0xff]  ;;  %548 = vperm.xlu2 %1861, %v402_v11   ;;  %v328_v16 = vld [vmem:[%s2037_s15 + $0x50] sm:$0xff]  ;;  %v329_v17 = vld [vmem:[%s2037_s15 + $0x58] sm:$0xff] }
  0x10   : > { %v340_v12 = vpack.c.bf16 %v331_v9, %v330_v8  ;;  %v403_v18 = vld [vmem:[%s2793_s3 + $0xe8] sm:$0xff]  ;;  %v339_v19 = vpack.c.bf16 %v329_v17, %v328_v16  ;;  %v326_v23 = vld [vmem:[%s2037_s15 + $0x40] sm:$0xff]  ;;  %v400_v25 = vld [vmem:[%s2793_s3 + $0xd0] sm:$0xff] }
  0x11   : > { %v717_v10 = vsel %vm646_vm0, %v341_v7, 0  ;;  %v327_v24 = vld [vmem:[%s2037_s15 + $0x48] sm:$0xff]  ;;  %v398_v27 = vld [vmem:[%s2793_s3 + $0xc0] sm:$0xff]  ;;  %v324_v30 = vld [vmem:[%s2037_s15 + $0x30] sm:$0xff] }
  0x12   : > { %719 = vmatpush.bf16.xpose.msra.mxu0 %v717_v10  ;;  %1840 = vmatpush.bf16.xpose.msra.mxu3 %v717_v10  ;;  %v714_v15 = vsel %vm646_vm0, %v340_v12, 0  ;;  %v711_v22 = vsel %vm646_vm0, %v339_v19, 0  ;;  %v338_v26 = vpack.c.bf16 %v327_v24, %v326_v23  ;;  %v399_v28 = vld [vmem:[%s2793_s3 + $0xc8] sm:$0xff]  ;;  %v325_v31 = vld [vmem:[%s2037_s15 + $0x38] sm:$0xff]  ;;  %v396_v34 = vld [vmem:[%s2793_s3 + $0xb0] sm:$0xff] }
  0x13   : > { %v337_v32 = vpack.c.bf16 %v325_v31, %v324_v30  ;;  %v383_v33 = vld [vmem:[%s2793_s3 + $0x48] sm:$0xff]  ;;  %v322_v36 = vld [vmem:[%s2037_s15 + $0x20] sm:$0xff]  ;;  %v385_v38 = vld [vmem:[%s2793_s3 + $0x58] sm:$0xff] }
  0x14   : > { %v708_v29 = vsel %vm646_vm0, %v338_v26, 0  ;;  %v323_v37 = vld [vmem:[%s2037_s15 + $0x28] sm:$0xff]  ;;  %v380_v40 = vld [vmem:[%s2793_s3 + $0x30] sm:$0xff]  ;;  %v381_v41 = vld [vmem:[%s2793_s3 + $0x38] sm:$0xff] }
  0x15   : > { %563 = vperm.xlu0 %1859, %v405_v3   ;;  %483 = vperm.xlu1 %1860, %v389_v6   ;;  %v705_v35 = vsel %vm646_vm0, %v337_v32, 0  ;;  %v336_v39 = vpack.c.bf16 %v323_v37, %v322_v36  ;;  %v320_v43 = vld [vmem:[%s2037_s15 + $0x10] sm:$0xff]  ;;  %v321_v44 = vld [vmem:[%s2037_s15 + $0x18] sm:$0xff]  ;;  %v382_v45 = vld [vmem:[%s2793_s3 + $0x40] sm:$0xff] }
  0x16   : > { %v335_v46 = vpack.c.bf16 %v321_v44, %v320_v43  ;;  %v395_v47 = vld [vmem:[%s2793_s3 + $0xa8] sm:$0xff]  ;;  %v378_v48 = vld [vmem:[%s2793_s3 + $0x20] sm:$0xff]  ;;  %v397_v52 = vld [vmem:[%s2793_s3 + $0xb8] sm:$0xff] }
  0x17   : > { %553 = vperm.xlu2 %1861, %v403_v18   ;;  %v702_v42 = vsel %vm646_vm0, %v336_v39, 0  ;;  %v318_v50 = vld [vmem:[%s2037_s15] sm:$0xff]  ;;  %v319_v51 = vld [vmem:[%s2037_s15 + $0x8] sm:$0xff]  ;;  %v392_v54 = vld [vmem:[%s2793_s3 + $0x90] sm:$0xff] }
  0x18   : > { %v699_v49 = vsel %vm646_vm0, %v335_v46, 0  ;;  %v334_v53 = vpack.c.bf16 %v319_v51, %v318_v50  ;;  %v393_v55 = vld [vmem:[%s2793_s3 + $0x98] sm:$0xff]  ;;  %v394_v57 = vld [vmem:[%s2793_s3 + $0xa0] sm:$0xff]  ;;  %v379_v62 = vld [vmem:[%s2793_s3 + $0x28] sm:$0xff] }
  0x19   : > { %v1808_v58 = vld [vmem:[%s2792_s2] sm:$0xff]  ;;  %v377_v60 = vld [vmem:[%s2793_s3 + $0x18] sm:$0xff]  ;;  %v375_v0 = vld [vmem:[%s2793_s3 + $0x8] sm:$0xff] }
  0x1a   : > { %720 = vmatpush.bf16.xpose.msra.mxu0 %v714_v15  ;;  %1841 = vmatpush.bf16.xpose.msra.mxu3 %v714_v15  ;;  %v696_v56 = vsel %vm646_vm0, %v334_v53, 0  ;;  %v1816_v59 = vld [vmem:[%s2792_s2 + $0x40] sm:$0xff]  ;;  %v376_v1 = vld [vmem:[%s2793_s3 + $0x10] sm:$0xff]  ;;  %v1809_v2 = vld [vmem:[%s2792_s2 + $0x8] sm:$0xff] }
  0x1b   : > { %v390_v61 = vld [vmem:[%s2793_s3 + $0x80] sm:$0xff]  ;;  %v1817_v3 = vld [vmem:[%s2792_s2 + $0x48] sm:$0xff]  ;;  %v1118_v5 = vld [vmem:[%s2795_s5 + $0x78] sm:$0xff] }
  0x1c   : > { %v374_v63 = vld [vmem:[%s2793_s3] sm:$0xff]  ;;  %v391_v4 = vld [vmem:[%s2793_s3 + $0x88] sm:$0xff]  ;;  %v1113_v7 = vld [vmem:[%s2795_s5 + $0x50] sm:$0xff] }
  0x1d   : > { %468 = vperm.xlu0 %1859, %v386_v13   ;;  %473 = vperm.xlu1 %1860, %v387_v14   ;;  %v1115_v6 = vld [vmem:[%s2795_s5 + $0x60] sm:$0xff]  ;;  %v1810_v8 = vld [vmem:[%s2792_s2 + $0x10] sm:$0xff]  ;;  %v1114_v10 = vld [vmem:[%s2795_s5 + $0x58] sm:$0xff] }
  0x1e   : > { %v1818_v9 = vld [vmem:[%s2792_s2 + $0x50] sm:$0xff]  ;;  %v1112_v11 = vld [vmem:[%s2795_s5 + $0x48] sm:$0xff]  ;;  %v1107_v13 = vld [vmem:[%s2795_s5 + $0x20] sm:$0xff] }
  0x1f   : > { %538 = vperm.xlu2 %1861, %v400_v25   ;;  %v1109_v12 = vld [vmem:[%s2795_s5 + $0x30] sm:$0xff]  ;;  %v1811_v17 = vld [vmem:[%s2792_s2 + $0x18] sm:$0xff]  ;;  %v1116_v24 = vld [vmem:[%s2795_s5 + $0x68] sm:$0xff] }
  0x20   : > { %v1117_v16 = vld [vmem:[%s2795_s5 + $0x70] sm:$0xff]  ;;  %v1819_v18 = vld [vmem:[%s2792_s2 + $0x58] sm:$0xff]  ;;  %v1103_v25 = vld [vmem:[%s2795_s5] sm:$0xff] }
  0x21   : > { %v1514_v26 = vld [vmem:[%s2797_s7] sm:$0xf]  ;;  %v1105_v39 = vld [vmem:[%s2795_s5 + $0x10] sm:$0xff] }
  0x22   : > { %721 = vmatpush.bf16.xpose.msra.mxu0 %v711_v22  ;;  %1842 = vmatpush.bf16.xpose.msra.mxu3 %v711_v22  ;;  %v1111_v30 = vld [vmem:[%s2795_s5 + $0x40] sm:$0xff]  ;;  %v1822_v50 = vld [vmem:[%s2792_s2 + $0x70] sm:$0xff] }
  0x23   : > { %v1812_v31 = vld [vmem:[%s2792_s2 + $0x20] sm:$0xff] }
  0x24   : > { %v1820_v32 = vld [vmem:[%s2792_s2 + $0x60] sm:$0xff] }
  0x25   : > { %543 = vperm.xlu0 %1859, %v401_v20   ;;  %458 = vperm.xlu1 %1860, %v384_v21   ;;  %v1108_v20 = vld [vmem:[%s2795_s5 + $0x28] sm:$0xff]  ;;  %v1106_v21 = vld [vmem:[%s2795_s5 + $0x18] sm:$0xff] }
  0x27   : > { %463 = vperm.xlu2 %1861, %v385_v38  }
  0x2a   : > { %722 = vmatpush.bf16.xpose.msra.mxu0 %v708_v29  ;;  %1843 = vmatpush.bf16.xpose.msra.mxu3 %v708_v29 }
  0x2d   : > { %528 = vperm.xlu0 %1859, %v398_v27   ;;  %533 = vperm.xlu1 %1860, %v399_v28  }
  0x2f   : > { %448 = vperm.xlu2 %1861, %v382_v45   ;;  %v1104_v45 = vld [vmem:[%s2795_s5 + $0x8] sm:$0xff] }
  0x32   : > { %723 = vmatpush.bf16.xpose.msra.mxu0 %v705_v35  ;;  %1844 = vmatpush.bf16.xpose.msra.mxu3 %v705_v35  ;;  %v1110_v35 = vld [vmem:[%s2795_s5 + $0x38] sm:$0xff] }
  0x35   : > { %453 = vperm.xlu0 %1859, %v383_v33   ;;  %518 = vperm.xlu1 %1860, %v396_v34  }
  0x37   : > { %523 = vperm.xlu2 %1861, %v397_v52  }
  0x3a   : > { %724 = vmatpush.bf16.xpose.msra.mxu0 %v702_v42  ;;  %1845 = vmatpush.bf16.xpose.msra.mxu3 %v702_v42 }
  0x3d   : > { %438 = vperm.xlu0 %1859, %v380_v40   ;;  %443 = vperm.xlu1 %1860, %v381_v41   ;;  %v1813_v40 = vld [vmem:[%s2792_s2 + $0x28] sm:$0xff] }
  0x3e   : > { %v1821_v41 = vld [vmem:[%s2792_s2 + $0x68] sm:$0xff] }
  0x3f   : > { %508 = vperm.xlu2 %1861, %v394_v57  }
  0x42   : > { %725 = vmatpush.bf16.xpose.msra.mxu0 %v699_v49  ;;  %1846 = vmatpush.bf16.xpose.msra.mxu3 %v699_v49  ;;  %v1814_v49 = vld [vmem:[%s2792_s2 + $0x30] sm:$0xff] }
  0x45   : > { %513 = vperm.xlu0 %1859, %v395_v47   ;;  %428 = vperm.xlu1 %1860, %v378_v48  }
  0x47   : > { %433 = vperm.xlu2 %1861, %v379_v62  }
  0x4a   : > { %726 = vmatpush.bf16.xpose.msra.mxu0 %v696_v56  ;;  %1847 = vmatpush.bf16.xpose.msra.mxu3 %v696_v56 }
  0x4d   : > { %498 = vperm.xlu0 %1859, %v392_v54   ;;  %503 = vperm.xlu1 %1860, %v393_v55   ;;  %v1970_v54 = vmov 0.1  }
  0x4e   : > { %1863 = vrcp.f32 %v1970_v54 }
  0x4f   : > { %418 = vperm.xlu2 %1861, %v376_v1  }
  0x51   : > { %1677 = vmatmul.msk.bf16.vlgmr.msra.gmra.mxu0 %vm646_vm0, %v1808_v58  ;;  %1685 = vmatmul.msk.bf16.vlgmr.msra.gmra.mxu3 %vm646_vm0, %v1816_v59  ;;  %v1815_v58 = vld [vmem:[%s2792_s2 + $0x38] sm:$0xff] }
  0x52   : > { %v1823_v59 = vld [vmem:[%s2792_s2 + $0x78] sm:$0xff] }
  0x54   : > { %v1864_v57 = vpop.eup %1863 }
  0x55   : > { %423 = vperm.xlu0 %1859, %v377_v60   ;;  %488 = vperm.xlu1 %1860, %v390_v61   ;;  %v841_v61 = vmul.f32 0.1, %v1864_v57  ;;  %vm845_vm1 = vweird.f32 %v1864_v57 }
  0x57   : > { %493 = vperm.xlu2 %1861, %v391_v4  }
  0x5d   : > { %408 = vperm.xlu0 %1859, %v374_v63   ;;  %413 = vperm.xlu1 %1860, %v375_v0   ;;  %v842_v63 = vsub.f32 1.0, %v841_v61 }
  0x5f   : > { %1191 = vperm.xlu2 %1861, %v1117_v16   ;;  %v843_v1 = vmul.f32 %v1864_v57, %v842_v63 }
  0x61   : > { %1678 = vmatmul.msk.bf16.gmra.mxu0 %vm646_vm0, %v1809_v2  ;;  %1686 = vmatmul.msk.bf16.gmra.mxu3 %vm646_vm0, %v1817_v3  ;;  %v844_v4 = vadd.f32 %v1864_v57, %v843_v1 }
  0x65   : > { %1196 = vperm.xlu0 %1859, %v1118_v5   ;;  %1181 = vperm.xlu1 %1860, %v1115_v6  }
  0x67   : > { %1186 = vperm.xlu2 %1861, %v1116_v24  }
  0x69   : > { %v2211_v19 = vpop.permute.xlu2 %548 }
  0x6d   : > { %1171 = vperm.xlu0 %1859, %v1113_v7   ;;  %1176 = vperm.xlu1 %1860, %v1114_v10   ;;  %v2318_v7 = vsel %vm845_vm1, %v1864_v57, %v844_v4 }
  0x6f   : > { %1161 = vperm.xlu2 %1861, %v1111_v30  }
  0x71   : > { %1679 = vmatmul.msk.bf16.gmra.mxu0 %vm646_vm0, %v1810_v8  ;;  %1687 = vmatmul.msk.bf16.gmra.mxu3 %vm646_vm0, %v1818_v9  ;;  %v2234_v27 = vpop.permute.xlu2 %553 }
  0x75   : > { %1166 = vperm.xlu0 %1859, %v1112_v11   ;;  %1151 = vperm.xlu1 %1860, %v1109_v12  }
  0x77   : > { %1156 = vperm.xlu2 %1861, %v1110_v35  }
  0x79   : > { %v2258_v36 = vpop.permute.xlu2 %538 }
  0x7d   : > { %1141 = vperm.xlu0 %1859, %v1107_v13   ;;  %1146 = vperm.xlu1 %1860, %v1108_v20  }
  0x7f   : > { %v2198_v14 = vpop.permute.xlu0 %558  ;;  %v2200_v15 = vpop.permute.xlu1 %478  ;;  %1131 = vperm.xlu2 %1861, %v1105_v39  }
  0x81   : > { %1680 = vmatmul.msk.bf16.gmra.mxu0 %vm646_vm0, %v1811_v17  ;;  %1688 = vmatmul.msk.bf16.gmra.mxu3 %vm646_vm0, %v1819_v18  ;;  %v2273_v42 = vpop.permute.xlu2 %463 }
  0x85   : > { %1136 = vperm.xlu0 %1859, %v1106_v21   ;;  %1121 = vperm.xlu1 %1860, %v1103_v25  }
  0x87   : > { %v2221_v22 = vpop.permute.xlu0 %563  ;;  %v2223_v23 = vpop.permute.xlu1 %483  ;;  %1126 = vperm.xlu2 %1861, %v1104_v45  }
  0x89   : > { %v2284_v46 = vpop.permute.xlu2 %448 }
  0x8d   : > { %1517 = vperm.xlu0 %1859, %v1514_v26  }
  0x8f   : > { %v2236_v28 = vpop.permute.xlu0 %468  ;;  %v2238_v29 = vpop.permute.xlu1 %473 }
  0x91   : > { %1681 = vmatmul.msk.bf16.gmra.mxu0 %vm646_vm0, %v1812_v31  ;;  %1689 = vmatmul.msk.bf16.gmra.mxu3 %vm646_vm0, %v1820_v32  ;;  %v2298_v51 = vpop.permute.xlu2 %523 }
  0x97   : > { %v2251_v33 = vpop.permute.xlu0 %543  ;;  %v2253_v34 = vpop.permute.xlu1 %458 }
  0x99   : > { %v2304_v56 = vpop.permute.xlu2 %508 }
  0x9f   : > { %v2260_v37 = vpop.permute.xlu0 %528  ;;  %v2262_v38 = vpop.permute.xlu1 %533 }
  0xa1   : > { %1682 = vmatmul.msk.bf16.gmra.mxu0 %vm646_vm0, %v1813_v40  ;;  %1690 = vmatmul.msk.bf16.gmra.mxu3 %vm646_vm0, %v1821_v41  ;;  %v2316_v0 = vpop.permute.xlu2 %433 }
  0xa7   : > { %v2277_v43 = vpop.permute.xlu0 %453  ;;  %v2279_v44 = vpop.permute.xlu1 %518 }
  0xa9   : > { %v419_v8 = vpop.permute.xlu2 %418 }
  0xaf   : > { %v2286_v47 = vpop.permute.xlu0 %438  ;;  %v2288_v48 = vpop.permute.xlu1 %443 }
  0xb1   : > { %1683 = vmatmul.msk.bf16.gmra.mxu0 %vm646_vm0, %v1814_v49  ;;  %1691 = vmatmul.msk.bf16.gmra.mxu3 %vm646_vm0, %v1822_v50  ;;  %v494_v25 = vpop.permute.xlu2 %493 }
  0xb7   : > { %v2300_v52 = vpop.permute.xlu0 %513  ;;  %v2302_v53 = vpop.permute.xlu1 %428 }
  0xbf   : > { %v499_v55 = vpop.permute.xlu0 %498  ;;  %v2312_v60 = vpop.permute.xlu1 %503 }
  0xc1   : > { %1684 = vmatmul.msk.bf16.gmra.mxu0 %vm646_vm0, %v1815_v58  ;;  %1692 = vmatmul.msk.bf16.gmra.mxu3 %vm646_vm0, %v1823_v59 }
  0xc7   : > { %v424_v62 = vpop.permute.xlu0 %423  ;;  %v489_v2 = vpop.permute.xlu1 %488 }
  0xce   : > { %v728_v5 = vpop.f32.mrf.mxu0 }
  0xcf   : > { %v409_v3 = vpop.permute.xlu0 %408  ;;  %v414_v12 = vpop.permute.xlu1 %413 }
  0xd0   : > { %v729_v6 = vadd.f32 %v728_v5, %v409_v3 }
  0xd2   : > { %v808_v9 = vmin.f32 %v729_v6, 0.0  ;;  %vm1007_vm2 = vcmp.gt.f32.partialorder %v729_v6, 0.0 }
  0xd4   : > { %v847_v10 = vmul.f32 %v2318_v7, %v808_v9  ;;  %v768_v11 = vpop.f32.mrf.mxu3 }
  0xd5   : > { %v2321_v16 = vadd.f32 %v768_v11, %v489_v2 }
  0xd6   : > { %v879_v13 = vmul.f32 1.442695, %v847_v10  ;;  %v730_v17 = vpop.f32.mrf.mxu0 }
  0xd7   : > { %v824_v18 = vmin.f32 %v2321_v16, 0.0  ;;  %v731_v20 = vadd.f32 %v730_v17, %v414_v12  ;;  %vm1023_vm4 = vcmp.gt.f32.partialorder %v2321_v16, 0.0 }
  0xd8   : > { %1865 = vpow2.f32 %v879_v13 }
  0xd9   : > { %v863_v21 = vmul.f32 %v2318_v7, %v824_v18  ;;  %v809_v24 = vmin.f32 %v731_v20, 0.0  ;;  %vm1008_vm3 = vcmp.gt.f32.partialorder %v731_v20, 0.0 }
  0xdb   : > { %v911_v26 = vmul.f32 1.442695, %v863_v21  ;;  %v848_v30 = vmul.f32 %v2318_v7, %v809_v24 }
  0xdc   : > { %v770_v31 = vpop.f32.mrf.mxu3 }
  0xdd   : > { %v881_v32 = vmul.f32 1.442695, %v848_v30  ;;  %v771_v35 = vadd.f32 %v770_v31, %v494_v25  ;;  %1867 = vpow2.f32 %v911_v26 }
  0xde   : > { %v733_v39 = vpop.f32.mrf.mxu0  ;;  %v1866_v40 = vpop.eup %1865 }
  0xdf   : > { %1869 = vpow2.f32 %v881_v32  ;;  %v825_v41 = vmin.f32 %v771_v35, 0.0  ;;  %v2326_v45 = vadd.f32 %v733_v39, %v419_v8  ;;  %v1693_v54 = vadd.f32 -1.0, %v1866_v40 }
  0xe0   : > { %vm1024_vm5 = vcmp.gt.f32.partialorder %v771_v35, 0.0 }
  0xe1   : > { %v864_v49 = vmul.f32 %v2318_v7, %v825_v41  ;;  %v810_v50 = vmin.f32 %v2326_v45, 0.0  ;;  %v975_v5 = vmul.f32 0.1, %v1693_v54  ;;  %vm1009_vm6 = vcmp.gt.f32.partialorder %v2326_v45, 0.0 }
  0xe3   : > { %v913_v57 = vmul.f32 1.442695, %v864_v49  ;;  %v849_v58 = vmul.f32 %v2318_v7, %v810_v50  ;;  %v1868_v59 = vpop.eup %1867  ;;  %v2335_v17 = vsel %vm1007_vm2, %v729_v6, %v975_v5 }
  0xe4   : > { %v773_v61 = vpop.f32.mrf.mxu3  ;;  %v1709_v11 = vadd.f32 -1.0, %v1868_v59 }
  0xe5   : > { %v1870_v63 = vpop.eup %1869  ;;  %1871 = vpow2.f32 %v913_v57  ;;  %v883_v1 = vmul.f32 1.442695, %v849_v58  ;;  %v2331_v2 = vadd.f32 %v773_v61, %v499_v55 }
  0xe6   : > { %v735_v3 = vpop.f32.mrf.mxu0  ;;  %v1694_v4 = vadd.f32 -1.0, %v1870_v63  ;;  %v991_v30 = vmul.f32 0.1, %v1709_v11 }
  0xe7   : > { %v826_v8 = vmin.f32 %v2331_v2, 0.0  ;;  %v736_v9 = vadd.f32 %v735_v3, %v424_v62  ;;  %1873 = vpow2.f32 %v883_v1  ;;  %vm1025_vm8 = vcmp.gt.f32.partialorder %v2331_v2, 0.0 }
  0xe8   : > { %v976_v10 = vmul.f32 0.1, %v1694_v4  ;;  %v2348_v49 = vsel %vm1023_vm4, %v2321_v16, %v991_v30 }
  0xe9   : > { %v865_v12 = vmul.f32 %v2318_v7, %v826_v8  ;;  %v811_v13 = vmin.f32 %v736_v9, 0.0  ;;  %vm1010_vm7 = vcmp.gt.f32.partialorder %v736_v9, 0.0 }
  0xea   : > { %v2337_v18 = vsel %vm1008_vm3, %v731_v20, %v976_v10 }
  0xeb   : > { %v1872_v55 = vpop.eup %1871  ;;  %v915_v21 = vmul.f32 1.442695, %v865_v12  ;;  %v850_v24 = vmul.f32 %v2318_v7, %v811_v13 }
  0xec   : > { %v775_v62 = vpop.f32.mrf.mxu3  ;;  %v1710_v26 = vadd.f32 -1.0, %v1872_v55 }
  0xed   : > { %v885_v31 = vmul.f32 1.442695, %v850_v24  ;;  %v776_v32 = vadd.f32 %v775_v62, %v2312_v60  ;;  %1875 = vpow2.f32 %v915_v21  ;;  %v1874_v6 = vpop.eup %1873 }
  0xee   : > { %v738_v39 = vpop.f32.mrf.mxu0  ;;  %v992_v40 = vmul.f32 0.1, %v1710_v26  ;;  %v1695_v58 = vadd.f32 -1.0, %v1874_v6 }
  0xef   : > { %1877 = vpow2.f32 %v885_v31  ;;  %v827_v20 = vmin.f32 %v776_v32, 0.0  ;;  %v2345_v41 = vadd.f32 %v738_v39, %v2302_v53  ;;  %vm1026_vm9 = vcmp.gt.f32.partialorder %v776_v32, 0.0 }
  0xf0   : > { %v2350_v50 = vsel %vm1024_vm5, %v771_v35, %v992_v40  ;;  %v977_v5 = vmul.f32 0.1, %v1695_v58 }
  0xf1   : > { %v866_v54 = vmul.f32 %v2318_v7, %v827_v20  ;;  %v812_v60 = vmin.f32 %v2345_v41, 0.0  ;;  %vm1011_vm10 = vcmp.gt.f32.partialorder %v2345_v41, 0.0 }
  0xf2   : > { %v2365_v21 = vsel %vm1009_vm6, %v2326_v45, %v977_v5 }
  0xf3   : > { %v917_v59 = vmul.f32 1.442695, %v866_v54  ;;  %v851_v61 = vmul.f32 %v2318_v7, %v812_v60  ;;  %v1876_v63 = vpop.eup %1875 }
  0xf4   : > { %v778_v53 = vpop.f32.mrf.mxu3  ;;  %v1711_v12 = vadd.f32 -1.0, %v1876_v63 }
  0xf5   : > { %v1878_v1 = vpop.eup %1877  ;;  %1879 = vpow2.f32 %v917_v59  ;;  %v887_v3 = vmul.f32 1.442695, %v851_v61  ;;  %v2358_v16 = vadd.f32 %v778_v53, %v2304_v56 }
  0xf6   : > { %v740_v35 = vpop.f32.mrf.mxu0  ;;  %v1696_v4 = vadd.f32 -1.0, %v1878_v1  ;;  %v993_v39 = vmul.f32 0.1, %v1711_v12 }
  0xf7   : > { %v828_v8 = vmin.f32 %v2358_v16, 0.0  ;;  %v741_v10 = vadd.f32 %v740_v35, %v2316_v0  ;;  %1881 = vpow2.f32 %v887_v3  ;;  %vm1027_vm12 = vcmp.gt.f32.partialorder %v2358_v16, 0.0 }
  0xf8   : > { %v978_v11 = vmul.f32 0.1, %v1696_v4  ;;  %v2378_v58 = vsel %vm1025_vm8, %v2331_v2, %v993_v39 }
  0xf9   : > { %v867_v13 = vmul.f32 %v2318_v7, %v828_v8  ;;  %v813_v55 = vmin.f32 %v741_v10, 0.0  ;;  %vm1012_vm11 = vcmp.gt.f32.partialorder %v741_v10, 0.0 }
  0xfa   : > { %v2367_v56 = vsel %vm1010_vm7, %v736_v9, %v978_v11 }
  0xfb   : > { %v1880_v24 = vpop.eup %1879  ;;  %v919_v62 = vmul.f32 1.442695, %v867_v13  ;;  %v852_v26 = vmul.f32 %v2318_v7, %v813_v55  ;;  %v1072_v0 = vpack.c.bf16 %v2367_v56, %v2365_v21  ;;  %v1824_v56 = vld [vmem:[%s2794_s4 + $0x4] sm:$0xf] }
  0xfc   : > { %v780_v30 = vpop.f32.mrf.mxu3  ;;  %v1712_v31 = vadd.f32 -1.0, %v1880_v24 }
  0xfd   : > { %v889_v40 = vmul.f32 1.442695, %v852_v26  ;;  %v781_v6 = vadd.f32 %v780_v30, %v2300_v52  ;;  %1883 = vpow2.f32 %v919_v62  ;;  %v1882_v45 = vpop.eup %1881 }
  0xfe   : > { %v743_v20 = vpop.f32.mrf.mxu0  ;;  %v994_v54 = vmul.f32 0.1, %v1712_v31  ;;  %v1697_v53 = vadd.f32 -1.0, %v1882_v45 }
  0xff   : > { %1885 = vpow2.f32 %v889_v40  ;;  %v829_v9 = vmin.f32 %v781_v6, 0.0  ;;  %v2375_v60 = vadd.f32 %v743_v20, %v2286_v47  ;;  %vm1028_vm13 = vcmp.gt.f32.partialorder %v781_v6, 0.0 }
 0x100   : > { %v2380_v59 = vsel %vm1026_vm9, %v776_v32, %v994_v54  ;;  %v979_v11 = vmul.f32 0.1, %v1697_v53 }
 0x101   : > { %v868_v61 = vmul.f32 %v2318_v7, %v829_v9  ;;  %v814_v52 = vmin.f32 %v2375_v60, 0.0  ;;  %vm1013_vm14 = vcmp.gt.f32.partialorder %v2375_v60, 0.0  ;;  %v2800_v21 = vpack.c.bf16 %v2380_v59, %v2378_v58  ;;  %v1826_v59 = vld [vmem:[%s2794_s4 + $0x14] sm:$0xf] }
 0x102   : > { %v2392_v30 = vsel %vm1011_vm10, %v2345_v41, %v979_v11 }
 0x103   : > { %v921_v1 = vmul.f32 1.442695, %v868_v61  ;;  %v853_v3 = vmul.f32 %v2318_v7, %v814_v52  ;;  %v1884_v35 = vpop.eup %1883 }
 0x104   : > { %v783_v47 = vpop.f32.mrf.mxu3  ;;  %v1713_v24 = vadd.f32 -1.0, %v1884_v35 }
 0x105   : > { %v1886_v4 = vpop.eup %1885  ;;  %1887 = vpow2.f32 %v921_v1  ;;  %v891_v5 = vmul.f32 1.442695, %v853_v3  ;;  %v784_v2 = vadd.f32 %v783_v47, %v2279_v44 }
 0x106   : > { %v745_v32 = vpop.f32.mrf.mxu0  ;;  %v1698_v8 = vadd.f32 -1.0, %v1886_v4  ;;  %v995_v45 = vmul.f32 0.1, %v1713_v24 }
 0x107   : > { %v830_v12 = vmin.f32 %v784_v2, 0.0  ;;  %v746_v13 = vadd.f32 %v745_v32, %v2288_v48  ;;  %1889 = vpow2.f32 %v891_v5  ;;  %vm1029_vm0 = vcmp.gt.f32.partialorder %v784_v2, 0.0 }
 0x108   : > { %v980_v55 = vmul.f32 0.1, %v1698_v8  ;;  %v2402_v1 = vsel %vm1027_vm12, %v2358_v16, %v995_v45 }
 0x109   : > { %v869_v62 = vmul.f32 %v2318_v7, %v830_v12  ;;  %v815_v26 = vmin.f32 %v746_v13, 0.0  ;;  %vm1014_vm15 = vcmp.gt.f32.partialorder %v746_v13, 0.0 }
 0x10a   : > { %v2394_v31 = vsel %vm1012_vm11, %v741_v10, %v980_v55 }
 0x10b   : > { %v1888_v44 = vpop.eup %1887  ;;  %v923_v39 = vmul.f32 1.442695, %v869_v62  ;;  %v854_v40 = vmul.f32 %v2318_v7, %v815_v26  ;;  %v1073_v48 = vpack.c.bf16 %v2394_v31, %v2392_v30  ;;  %v2799_v31 = vpack.c.bf16 %v2337_v18, %v2335_v17  ;;  %v1735_v17 = vld [vmem:[%s2794_s4 + $0x10] sm:$0xf]  ;;  %v1827_v18 = vld [vmem:[%s2794_s4 + $0x14] sm:$0xf0] }
 0x10c   : > { %v785_v20 = vpop.f32.mrf.mxu3  ;;  %v1714_v54 = vadd.f32 -1.0, %v1888_v44  ;;  %v1736_v58 = vor.u32 %v1827_v18, %v1735_v17 }
 0x10d   : > { %v893_v9 = vmul.f32 1.442695, %v854_v40  ;;  %v786_v61 = vadd.f32 %v785_v20, %v2298_v51  ;;  %1891 = vpow2.f32 %v923_v39  ;;  %v1890_v41 = vpop.eup %1889 }
 0x10e   : > { %v748_v52 = vpop.f32.mrf.mxu0  ;;  %v996_v53 = vmul.f32 0.1, %v1714_v54  ;;  %v1699_v51 = vadd.f32 -1.0, %v1890_v41 }
 0x10f   : > { %1893 = vpow2.f32 %v893_v9  ;;  %v831_v10 = vmin.f32 %v786_v61, 0.0  ;;  %vm1030_vm1 = vcmp.gt.f32.partialorder %v786_v61, 0.0 }
 0x110   : > { %v2404_v3 = vsel %vm1028_vm13, %v781_v6, %v996_v53  ;;  %v981_v55 = vmul.f32 0.1, %v1699_v51 }
 0x111   : > { %v870_v35 = vmul.f32 %v2318_v7, %v831_v10  ;;  %v1081_v47 = vpack.c.bf16 %v2404_v3, %v2402_v1  ;;  %v2801_v1 = vpack.c.bf16 %v2350_v50, %v2348_v49  ;;  %v1737_v3 = vld [vmem:[%s2794_s4 + $0x18] sm:$0xf0]  ;;  %v1743_v50 = vld [vmem:[%s2794_s4 + $0x20] sm:$0xf] }
 0x112   : > { %v2411_v16 = vsel %vm1013_vm14, %v2375_v60, %v981_v55  ;;  %v1740_v49 = vor.u32 %v1826_v59, %v1737_v3 }
 0x113   : > { %v925_v4 = vmul.f32 1.442695, %v870_v35  ;;  %v1892_v5 = vpop.eup %1891 }
 0x114   : > { %v788_v32 = vpop.f32.mrf.mxu3  ;;  %v1715_v62 = vadd.f32 -1.0, %v1892_v5 }
 0x115   : > { %v1894_v8 = vpop.eup %1893  ;;  %1895 = vpow2.f32 %v925_v4 }
 0x116   : > { %v750_v11 = vpop.f32.mrf.mxu0  ;;  %v1700_v12 = vadd.f32 -1.0, %v1894_v8  ;;  %v997_v20 = vmul.f32 0.1, %v1715_v62 }
 0x117   : > { %v2424_v5 = vadd.f32 %v750_v11, %v2277_v43  ;;  %v2446_v11 = vadd.f32 %v748_v52, %v2284_v46 }
 0x118   : > { %v982_v24 = vmul.f32 0.1, %v1700_v12  ;;  %v2417_v9 = vsel %vm1029_vm0, %v784_v2, %v997_v20 }
 0x119   : > { %v817_v55 = vmin.f32 %v2424_v5, 0.0  ;;  %vm1016_vm12 = vcmp.gt.f32.partialorder %v2424_v5, 0.0  ;;  %vm1015_vm13 = vcmp.gt.f32.partialorder %v2446_v11, 0.0 }
 0x11a   : > { %v2413_v6 = vsel %vm1014_vm15, %v746_v13, %v982_v24 }
 0x11b   : > { %v1896_v26 = vpop.eup %1895  ;;  %v1074_v44 = vpack.c.bf16 %v2413_v6, %v2411_v16  ;;  %v856_v20 = vmul.f32 %v2318_v7, %v817_v55  ;;  %v1825_v16 = vld [vmem:[%s2794_s4 + $0x4] sm:$0xf0] }
 0x11c   : > { %v790_v39 = vpop.f32.mrf.mxu3  ;;  %v1716_v40 = vadd.f32 -1.0, %v1896_v26 }
 0x11d   : > { %v897_v55 = vmul.f32 1.442695, %v856_v20 }
 0x11e   : > { %v753_v54 = vpop.f32.mrf.mxu0  ;;  %v998_v45 = vmul.f32 0.1, %v1716_v40 }
 0x11f   : > { %v2441_v43 = vadd.f32 %v753_v54, %v2253_v34 }
 0x120   : > { %v2419_v53 = vsel %vm1030_vm1, %v786_v61, %v998_v45 }
 0x121   : > { %v1082_v60 = vpack.c.bf16 %v2419_v53, %v2417_v9  ;;  %v818_v45 = vmin.f32 %v2441_v43, 0.0  ;;  %vm1017_vm9 = vcmp.gt.f32.partialorder %v2441_v43, 0.0  ;;  %v1745_v9 = vld [vmem:[%s2794_s4 + $0x28] sm:$0xf0] }
 0x124   : > { %v793_v13 = vpop.f32.mrf.mxu3 }
 0x126   : > { %v755_v41 = vpop.f32.mrf.mxu0 }
 0x127   : > { %v2430_v2 = vadd.f32 %v755_v41, %v2273_v42 }
 0x129   : > { %vm1018_vm6 = vcmp.gt.f32.partialorder %v2430_v2, 0.0 }
 0x12c   : > { %v795_v10 = vpop.f32.mrf.mxu3 }
 0x12d   : > { %v2461_v46 = vadd.f32 %v795_v10, %v2251_v33  ;;  %v2476_v33 = vadd.f32 %v793_v13, %v2258_v36 }
 0x12e   : > { %v758_v35 = vpop.f32.mrf.mxu0 }
 0x12f   : > { %v2433_v61 = vadd.f32 %v758_v35, %v2236_v28  ;;  %v816_v35 = vmin.f32 %v2446_v11, 0.0  ;;  %vm1034_vm14 = vcmp.gt.f32.partialorder %v2461_v46, 0.0  ;;  %vm1033_vm15 = vcmp.gt.f32.partialorder %v2476_v33, 0.0 }
 0x131   : > { %v820_v42 = vmin.f32 %v2433_v61, 0.0  ;;  %v855_v13 = vmul.f32 %v2318_v7, %v816_v35  ;;  %vm1019_vm5 = vcmp.gt.f32.partialorder %v2433_v61, 0.0 }
 0x134   : > { %v798_v51 = vpop.f32.mrf.mxu3 }
 0x136   : > { %v760_v4 = vpop.f32.mrf.mxu0 }
 0x137   : > { %v2427_v8 = vadd.f32 %v760_v4, %v2238_v29  ;;  %v819_v29 = vmin.f32 %v2430_v2, 0.0 }
 0x139   : > { %v821_v62 = vmin.f32 %v2427_v8, 0.0  ;;  %v858_v41 = vmul.f32 %v2318_v7, %v819_v29  ;;  %vm1020_vm4 = vcmp.gt.f32.partialorder %v2427_v8, 0.0 }
 0x13b   : > { %v860_v34 = vmul.f32 %v2318_v7, %v821_v62 }
 0x13c   : > { %v800_v12 = vpop.f32.mrf.mxu3 }
 0x13d   : > { %v2449_v28 = vadd.f32 %v800_v12, %v2234_v27  ;;  %v859_v27 = vmul.f32 %v2318_v7, %v820_v42  ;;  %v2470_v12 = vadd.f32 %v788_v32, %v2260_v37  ;;  %v905_v29 = vmul.f32 1.442695, %v860_v34 }
 0x13e   : > { %v763_v24 = vpop.f32.mrf.mxu0  ;;  %v901_v37 = vmul.f32 1.442695, %v858_v41  ;;  %v835_v32 = vmin.f32 %v2461_v46, 0.0 }
 0x13f   : > { %v2438_v26 = vadd.f32 %v763_v24, %v2200_v15  ;;  %v2454_v15 = vadd.f32 %v798_v51, %v2211_v19  ;;  %v837_v4 = vmin.f32 %v2449_v28, 0.0  ;;  %v2473_v24 = vadd.f32 %v790_v39, %v2262_v38 }
 0x140   : > { %v903_v20 = vmul.f32 1.442695, %v859_v27  ;;  %v832_v34 = vmin.f32 %v2470_v12, 0.0  ;;  %vm1036_vm10 = vcmp.gt.f32.partialorder %v2449_v28, 0.0  ;;  %vm1031_vm1 = vcmp.gt.f32.partialorder %v2470_v12, 0.0 }
 0x141   : > { %v822_v40 = vmin.f32 %v2438_v26, 0.0  ;;  %v836_v62 = vmin.f32 %v2454_v15, 0.0  ;;  %v876_v38 = vmul.f32 %v2318_v7, %v837_v4  ;;  %v833_v27 = vmin.f32 %v2473_v24, 0.0 }
 0x142   : > { %v874_v4 = vmul.f32 %v2318_v7, %v835_v32  ;;  %vm1021_vm2 = vcmp.gt.f32.partialorder %v2438_v26, 0.0  ;;  %vm1035_vm11 = vcmp.gt.f32.partialorder %v2454_v15, 0.0  ;;  %vm1032_vm0 = vcmp.gt.f32.partialorder %v2473_v24, 0.0 }
 0x143   : > { %v861_v54 = vmul.f32 %v2318_v7, %v822_v40  ;;  %v937_v35 = vmul.f32 1.442695, %v876_v38  ;;  %v872_v32 = vmul.f32 %v2318_v7, %v833_v27 }
 0x144   : > { %v803_v52 = vpop.f32.mrf.mxu3 }
 0x145   : > { %v907_v19 = vmul.f32 1.442695, %v861_v54  ;;  %v2467_v51 = vadd.f32 %v803_v52, %v2198_v14  ;;  %v857_v14 = vmul.f32 %v2318_v7, %v818_v45  ;;  %v875_v54 = vmul.f32 %v2318_v7, %v836_v62 }
 0x146   : > { %v765_v10 = vpop.f32.mrf.mxu0  ;;  %v929_v57 = vmul.f32 1.442695, %v872_v32 }
 0x147   : > { %v838_v42 = vmin.f32 %v2467_v51, 0.0  ;;  %v2481_v40 = vadd.f32 %v765_v10, %v2223_v23  ;;  %1897 = vpow2.f32 %v907_v19  ;;  %v834_v23 = vmin.f32 %v2476_v33, 0.0 }
 0x148   : > { %1899 = vpow2.f32 %v897_v55  ;;  %v899_v52 = vmul.f32 1.442695, %v857_v14  ;;  %vm1037_vm7 = vcmp.gt.f32.partialorder %v2467_v51, 0.0 }
 0x149   : > { %v877_v36 = vmul.f32 %v2318_v7, %v838_v42  ;;  %v823_v39 = vmin.f32 %v2481_v40, 0.0  ;;  %1901 = vpow2.f32 %v905_v29  ;;  %v895_v42 = vmul.f32 1.442695, %v855_v13 }
 0x14a   : > { %1903 = vpow2.f32 %v901_v37  ;;  %v873_v62 = vmul.f32 %v2318_v7, %v834_v23  ;;  %vm1022_vm3 = vcmp.gt.f32.partialorder %v2481_v40, 0.0 }
 0x14b   : > { %v939_v45 = vmul.f32 1.442695, %v877_v36  ;;  %v862_v41 = vmul.f32 %v2318_v7, %v823_v39  ;;  %1905 = vpow2.f32 %v903_v20  ;;  %v871_v36 = vmul.f32 %v2318_v7, %v832_v34 }
 0x14c   : > { %v805_v19 = vpop.f32.mrf.mxu3  ;;  %v935_v39 = vmul.f32 1.442695, %v875_v54  ;;  %v933_v20 = vmul.f32 1.442695, %v874_v4  ;;  %v931_v23 = vmul.f32 1.442695, %v873_v62 }
 0x14d   : > { %v909_v10 = vmul.f32 1.442695, %v862_v41  ;;  %v2496_v55 = vadd.f32 %v805_v19, %v2221_v22  ;;  %1907 = vpow2.f32 %v939_v45  ;;  %v1898_v29 = vpop.eup %1897  ;;  %v927_v19 = vmul.f32 1.442695, %v871_v36 }
 0x14e   : > { %v1900_v37 = vpop.eup %1899  ;;  %v1707_v45 = vadd.f32 -1.0, %v1898_v29 }
 0x14f   : > { %v839_v14 = vmin.f32 %v2496_v55, 0.0  ;;  %1909 = vpow2.f32 %v909_v10  ;;  %v1902_v38 = vpop.eup %1901  ;;  %vm1038_vm8 = vcmp.gt.f32.partialorder %v2496_v55, 0.0 }
 0x150   : > { %1911 = vpow2.f32 %v899_v52  ;;  %v1904_v13 = vpop.eup %1903  ;;  %v1706_v10 = vadd.f32 -1.0, %v1902_v38  ;;  %v989_v4 = vmul.f32 0.1, %v1707_v45 }
 0x151   : > { %1913 = vpow2.f32 %v937_v35  ;;  %v878_v22 = vmul.f32 %v2318_v7, %v839_v14  ;;  %v1906_v41 = vpop.eup %1905 }
 0x152   : > { %1915 = vpow2.f32 %v895_v42  ;;  %v1705_v35 = vadd.f32 -1.0, %v1906_v41  ;;  %v1704_v42 = vadd.f32 -1.0, %v1904_v13  ;;  %v988_v36 = vmul.f32 0.1, %v1706_v10 }
 0x153   : > { %1917 = vpow2.f32 %v935_v39  ;;  %v941_v34 = vmul.f32 1.442695, %v878_v22  ;;  %v1908_v54 = vpop.eup %1907 }
 0x154   : > { %1919 = vpow2.f32 %v933_v20  ;;  %v1723_v39 = vadd.f32 -1.0, %v1908_v54  ;;  %v1702_v20 = vadd.f32 -1.0, %v1900_v37  ;;  %v987_v45 = vmul.f32 0.1, %v1705_v35 }
 0x155   : > { %v1910_v63 = vpop.eup %1909  ;;  %1921 = vpow2.f32 %v941_v34  ;;  %v1052_v10 = vsel %vm1020_vm4, %v2427_v8, %v988_v36 }
 0x156   : > { %v1912_v27 = vpop.eup %1911  ;;  %1923 = vpow2.f32 %v931_v23  ;;  %v1708_v52 = vadd.f32 -1.0, %v1910_v63  ;;  %v1053_v63 = vsel %vm1021_vm2, %v2438_v26, %v989_v4  ;;  %v1005_v25 = vmul.f32 0.1, %v1723_v39 }
 0x157   : > { %v1914_v14 = vpop.eup %1913  ;;  %1925 = vpow2.f32 %v927_v19  ;;  %v1703_v32 = vadd.f32 -1.0, %v1912_v27  ;;  %v1051_v35 = vsel %vm1019_vm5, %v2433_v61, %v987_v45 }
 0x158   : > { %v1916_v62 = vpop.eup %1915  ;;  %1927 = vpow2.f32 %v929_v57  ;;  %v990_v29 = vmul.f32 0.1, %v1708_v52  ;;  %v1722_v41 = vadd.f32 -1.0, %v1914_v14  ;;  %v986_v57 = vmul.f32 0.1, %v1704_v42 }
 0x159   : > { %v1918_v22 = vpop.eup %1917  ;;  %v1701_v34 = vadd.f32 -1.0, %v1916_v62  ;;  %v985_v26 = vmul.f32 0.1, %v1703_v32  ;;  %v1069_v36 = vsel %vm1037_vm7, %v2467_v51, %v1005_v25 }
 0x15a   : > { %v1920_v38 = vpop.eup %1919  ;;  %v1054_v23 = vsel %vm1022_vm3, %v2481_v40, %v990_v29  ;;  %v1721_v27 = vadd.f32 -1.0, %v1918_v22  ;;  %v984_v40 = vmul.f32 0.1, %v1702_v20  ;;  %v1004_v42 = vmul.f32 0.1, %v1722_v41 }
 0x15b   : > { %v1922_v13 = vpop.eup %1921  ;;  %v1078_v19 = vpack.c.bf16 %v1054_v23, %v1053_v63  ;;  %v1720_v62 = vadd.f32 -1.0, %v1920_v38  ;;  %v1077_v29 = vpack.c.bf16 %v1052_v10, %v1051_v35  ;;  %v1050_v22 = vsel %vm1018_vm6, %v2430_v2, %v986_v57  ;;  %v1830_v10 = vld [vmem:[%s2794_s4 + $0x34] sm:$0xf]  ;;  %v1761_v35 = vld [vmem:[%s2794_s4 + $0x48] sm:$0xf0] }
 0x15c   : > { %v1924_v54 = vpop.eup %1923  ;;  %v1724_v52 = vadd.f32 -1.0, %v1922_v13  ;;  %v1003_v32 = vmul.f32 0.1, %v1721_v27  ;;  %v983_v61 = vmul.f32 0.1, %v1701_v34  ;;  %v1049_v38 = vsel %vm1017_vm9, %v2441_v43, %v985_v26 }
 0x15d   : > { %v1926_v37 = vpop.eup %1925  ;;  %1279 = vmatpush.bf16.msra.mxu1 %v1078_v19  ;;  %v1719_v8 = vadd.f32 -1.0, %v1924_v54  ;;  %v1068_v63 = vsel %vm1036_vm10, %v2449_v28, %v1004_v42  ;;  %v1002_v23 = vmul.f32 0.1, %v1720_v62  ;;  %v1076_v25 = vpack.c.bf16 %v1050_v22, %v1049_v38  ;;  %v1833_v26 = vld [vmem:[%s2794_s4 + $0x44] sm:$0xf0]  ;;  %v2639_v38 = vpop.permute.xlu1 %1181 }
 0x15e   : > { %v1928_v4 = vpop.eup %1927  ;;  %v1006_v14 = vmul.f32 0.1, %v1724_v52  ;;  %v1067_v2 = vsel %vm1035_vm11, %v2454_v15, %v1003_v32  ;;  %v1048_v51 = vsel %vm1016_vm12, %v2424_v5, %v984_v40  ;;  %v1717_v41 = vadd.f32 -1.0, %v1926_v37  ;;  %v1753_v52 = vld [vmem:[%s2794_s4 + $0x38] sm:$0xf0] }
 0x15f   : > { %v1718_v45 = vadd.f32 -1.0, %v1928_v4  ;;  %v1085_v13 = vpack.c.bf16 %v1068_v63, %v1067_v2  ;;  %v1047_v43 = vsel %vm1015_vm13, %v2446_v11, %v983_v61  ;;  %v1066_v28 = vsel %vm1034_vm14, %v2461_v46, %v1002_v23  ;;  %v1759_v37 = vld [vmem:[%s2794_s4 + $0x40] sm:$0xf]  ;;  %v1832_v4 = vld [vmem:[%s2794_s4 + $0x44] sm:$0xf]  ;;  %v2637_v61 = vpop.permute.xlu2 %1191 }
 0x160   : > { %v1070_v39 = vsel %vm1038_vm8, %v2496_v55, %v1006_v14  ;;  %v1001_v55 = vmul.f32 0.1, %v1719_v8  ;;  %v1075_v57 = vpack.c.bf16 %v1048_v51, %v1047_v43  ;;  %v999_v5 = vmul.f32 0.1, %v1717_v41  ;;  %v1767_v42 = vld [vmem:[%s2794_s4 + $0x50] sm:$0xf] }
 0x161   : > { %1280 = vmatpush.bf16.msra.mxu1 %v1077_v29  ;;  %v1086_v20 = vpack.c.bf16 %v1070_v39, %v1069_v36  ;;  %v1000_v19 = vmul.f32 0.1, %v1718_v45  ;;  %v1756_v27 = vor.u32 %v1830_v10, %v1753_v52  ;;  %v1760_v40 = vor.u32 %v1833_v26, %v1759_v37  ;;  %v1835_v62 = vld [vmem:[%s2794_s4 + $0x54] sm:$0xf0]  ;;  %v1834_v8 = vld [vmem:[%s2794_s4 + $0x54] sm:$0xf] }
 0x162   : > { %v1065_v15 = vsel %vm1033_vm15, %v2476_v33, %v1001_v55  ;;  %v1063_v11 = vsel %vm1031_vm1, %v2470_v12, %v999_v5  ;;  %v1727_v12 = vld [vmem:[%s2794_s4] sm:$0xf]  ;;  %v1764_v14 = vor.u32 %v1832_v4, %v1761_v35  ;;  %v1768_v29 = vor.u32 %v1835_v62, %v1767_v42  ;;  %v1769_v36 = vld [vmem:[%s2794_s4 + $0x58] sm:$0xf0]  ;;  %v1837_v32 = vld [vmem:[%s2794_s4 + $0x64] sm:$0xf0] }
 0x163   : > { %1328 = vmatpush.bf16.msra.mxu2 %v1086_v20  ;;  %v1084_v34 = vpack.c.bf16 %v1066_v28, %v1065_v15  ;;  %v1064_v54 = vsel %vm1032_vm0, %v2473_v24, %v1000_v19  ;;  %v1728_v30 = vor.u32 %v1825_v16, %v1727_v12  ;;  %v1831_v24 = vld [vmem:[%s2794_s4 + $0x34] sm:$0xf0]  ;;  %v1772_v39 = vor.u32 %v1834_v8, %v1769_v36  ;;  %v1775_v22 = vld [vmem:[%s2794_s4 + $0x60] sm:$0xf]  ;;  %v1836_v63 = vld [vmem:[%s2794_s4 + $0x64] sm:$0xf]  ;;  %v2667_v15 = vpop.permute.xlu0 %1196 }
 0x164   : > { %v1083_v46 = vpack.c.bf16 %v1064_v54, %v1063_v11  ;;  %v1776_v20 = vor.u32 %v1837_v32, %v1775_v22  ;;  %v1777_v23 = vld [vmem:[%s2794_s4 + $0x68] sm:$0xf0]  ;;  %v1783_v51 = vld [vmem:[%s2794_s4 + $0x70] sm:$0xf]  ;;  %v1839_v55 = vld [vmem:[%s2794_s4 + $0x74] sm:$0xf0] }
 0x165   : > { %1281 = vmatpush.bf16.msra.mxu1 %v1076_v25  ;;  %v1780_v45 = vor.u32 %v1836_v63, %v1777_v23  ;;  %v2649_v2 = vpop.permute.xlu1 %1176  ;;  %v1784_v41 = vor.u32 %v1839_v55, %v1783_v51  ;;  %v1785_v43 = vld [vmem:[%s2794_s4 + $0x78] sm:$0xf0] }
 0x167   : > { %1329 = vmatpush.bf16.msra.mxu2 %v1085_v13  ;;  %v2647_v25 = vpop.permute.xlu2 %1186  ;;  %v1838_v13 = vld [vmem:[%s2794_s4 + $0x74] sm:$0xf] }
 0x168   : > { %v1788_v19 = vor.u32 %v1838_v13, %v1785_v43 }
 0x169   : > { %1282 = vmatpush.bf16.msra.mxu1 %v1075_v57 }
 0x16b   : > { %1330 = vmatpush.bf16.msra.mxu2 %v1084_v34  ;;  %v2671_v11 = vpop.permute.xlu0 %1171 }
 0x16d   : > { %1283 = vmatpush.bf16.msra.mxu1 %v1074_v44  ;;  %v1828_v44 = vld [vmem:[%s2794_s4 + $0x24] sm:$0xf]  ;;  %v2665_v57 = vpop.permute.xlu1 %1151 }
 0x16e   : > { %v1748_v53 = vor.u32 %v1828_v44, %v1745_v9 }
 0x16f   : > { %1331 = vmatpush.bf16.msra.mxu2 %v1083_v46  ;;  %v2663_v28 = vpop.permute.xlu2 %1161 }
 0x171   : > { %1284 = vmatpush.bf16.msra.mxu1 %v1073_v48 }
 0x173   : > { %1332 = vmatpush.bf16.msra.mxu2 %v1082_v60  ;;  %v1751_v60 = vld [vmem:[%s2794_s4 + $0x30] sm:$0xf] }
 0x174   : > { %v1752_v33 = vor.u32 %v1831_v24, %v1751_v60 }
 0x175   : > { %1285 = vmatpush.bf16.msra.mxu1 %v1072_v0  ;;  %v1729_v0 = vld [vmem:[%s2794_s4 + $0x8] sm:$0xf0]  ;;  %v1147_v34 = vpop.permute.xlu1 %1146 }
 0x176   : > { %v1732_v48 = vor.u32 %v1824_v56, %v1729_v0  ;;  %v2673_v56 = vpop.permute.xlu0 %1166 }
 0x177   : > { %1333 = vmatpush.bf16.msra.mxu2 %v1081_v47  ;;  %v1829_v47 = vld [vmem:[%s2794_s4 + $0x24] sm:$0xf0]  ;;  %v2669_v5 = vpop.permute.xlu2 %1156 }
 0x178   : > { %v1744_v6 = vor.u32 %v1829_v47, %v1743_v50 }
 0x179   : > { %1286 = vmatpush.bf16.msra.mxu1 %v2799_v31 }
 0x17b   : > { %1334 = vmatpush.bf16.msra.mxu2 %v2800_v21 }
 0x17c   : > { %1287 = vmatmul.bf16.vlgmr.msra.gmra.mxu1 %v1728_v30 }
 0x17d   : > { %v1122_v16 = vpop.permute.xlu1 %1121 }
 0x17e   : > { %v1142_v50 = vpop.permute.xlu0 %1141 }
 0x17f   : > { %1335 = vmatpush.bf16.msra.mxu2 %v2801_v1  ;;  %v1132_v46 = vpop.permute.xlu2 %1131 }
 0x182   : > { %1336 = vmatmul.bf16.vlgmr.msra.gmra.mxu2 %v1732_v48 }
 0x186   : > { %v1137_v37 = vpop.permute.xlu0 %1136 }
 0x187   : > { %v1127_v17 = vpop.permute.xlu2 %1126 }
 0x18c   : > { %1292 = vmatmul.bf16.gmra.mxu1 %v1736_v58 }
 0x192   : > { %1341 = vmatmul.bf16.gmra.mxu2 %v1740_v49 }
 0x19c   : > { %1297 = vmatmul.bf16.gmra.mxu1 %v1744_v6 }
 0x1a2   : > { %1346 = vmatmul.bf16.gmra.mxu2 %v1748_v53 }
 0x1ac   : > { %1302 = vmatmul.bf16.gmra.mxu1 %v1752_v33 }
 0x1b2   : > { %1351 = vmatmul.bf16.gmra.mxu2 %v1756_v27 }
 0x1bc   : > { %1307 = vmatmul.bf16.gmra.mxu1 %v1760_v40 }
 0x1c2   : > { %1356 = vmatmul.bf16.gmra.mxu2 %v1764_v14 }
 0x1cc   : > { %1312 = vmatmul.bf16.gmra.mxu1 %v1768_v29 }
 0x1d2   : > { %1361 = vmatmul.bf16.gmra.mxu2 %v1772_v39 }
 0x1dc   : > { %1317 = vmatmul.bf16.gmra.mxu1 %v1776_v20 }
 0x1e2   : > { %1366 = vmatmul.bf16.gmra.mxu2 %v1780_v45 }
 0x1ec   : > { %1322 = vmatmul.bf16.gmra.mxu1 %v1784_v41 }
 0x1f2   : > { %1371 = vmatmul.bf16.gmra.mxu2 %v1788_v19 }
 0x1f9   : > { %v1288_v54 = vpop.f32.mrf.mxu1 }
 0x1fa   : > { %v1289_v30 = vadd.f32 %v1288_v54, %v1122_v16 }
 0x201   : > { %v1290_v12 = vpop.f32.mrf.mxu1 }
 0x202   : > { %v1291_v18 = vadd.f32 %v1290_v12, %v1127_v17 }
 0x205   : > { %v1337_v31 = vpop.f32.mrf.mxu2 }
 0x206   : > { %v1338_v21 = vadd.f32 %v1337_v31, %v1289_v30 }
 0x208   : > { %v1377_v0 = vmin.f32 %v1338_v21, 0.0  ;;  %vm1473_vm2 = vcmp.gt.f32.partialorder %v1338_v21, 0.0 }
 0x209   : > { %v1293_v48 = vpop.f32.mrf.mxu1 }
 0x20a   : > { %v1393_v1 = vmul.f32 %v1377_v0, %v2318_v7  ;;  %v1294_v44 = vadd.f32 %v1293_v48, %v1132_v46 }
 0x20c   : > { %v1409_v58 = vmul.f32 1.442695, %v1393_v1 }
 0x20d   : > { %v1339_v59 = vpop.f32.mrf.mxu2 }
 0x20e   : > { %v1340_v3 = vadd.f32 %v1339_v59, %v1291_v18  ;;  %1929 = vpow2.f32 %v1409_v58 }
 0x210   : > { %v1378_v49 = vmin.f32 %v1340_v3, 0.0  ;;  %vm1474_vm3 = vcmp.gt.f32.partialorder %v1340_v3, 0.0 }
 0x211   : > { %v1295_v47 = vpop.f32.mrf.mxu1 }
 0x212   : > { %v1394_v6 = vmul.f32 %v1378_v49, %v2318_v7  ;;  %v1296_v40 = vadd.f32 %v1295_v47, %v1137_v37 }
 0x214   : > { %v1411_v9 = vmul.f32 1.442695, %v1394_v6  ;;  %v1930_v60 = vpop.eup %1929 }
 0x215   : > { %v1342_v53 = vpop.f32.mrf.mxu2  ;;  %v1789_v52 = vadd.f32 -1.0, %v1930_v60 }
 0x216   : > { %1931 = vpow2.f32 %v1411_v9  ;;  %v1343_v24 = vadd.f32 %v1342_v53, %v1294_v44 }
 0x217   : > { %v1457_v42 = vmul.f32 0.1, %v1789_v52 }
 0x218   : > { %v1379_v33 = vmin.f32 %v1343_v24, 0.0  ;;  %vm1475_vm4 = vcmp.gt.f32.partialorder %v1343_v24, 0.0 }
 0x219   : > { %v1298_v10 = vpop.f32.mrf.mxu1  ;;  %v2678_v39 = vsel %vm1473_vm2, %v1338_v21, %v1457_v42 }
 0x21a   : > { %v1395_v27 = vmul.f32 %v1379_v33, %v2318_v7  ;;  %v1299_v63 = vadd.f32 %v1298_v10, %v1142_v50 }
 0x21c   : > { %v1932_v26 = vpop.eup %1931  ;;  %v1413_v4 = vmul.f32 1.442695, %v1395_v27 }
 0x21d   : > { %v1344_v35 = vpop.f32.mrf.mxu2  ;;  %v1790_v14 = vadd.f32 -1.0, %v1932_v26 }
 0x21e   : > { %v1345_v62 = vadd.f32 %v1344_v35, %v1296_v40  ;;  %1933 = vpow2.f32 %v1413_v4 }
 0x21f   : > { %v1458_v29 = vmul.f32 0.1, %v1790_v14 }
 0x220   : > { %v1380_v8 = vmin.f32 %v1345_v62, 0.0  ;;  %vm1476_vm5 = vcmp.gt.f32.partialorder %v1345_v62, 0.0 }
 0x221   : > { %v1300_v36 = vpop.f32.mrf.mxu1  ;;  %v2680_v22 = vsel %vm1474_vm3, %v1340_v3, %v1458_v29  ;;  %vm1541_vm3 = vcmask 1043456  }
 0x222   : > { %v1396_v32 = vmul.f32 %v1380_v8, %v2318_v7  ;;  %v1505_v20 = vpack.c.bf16 %v2680_v22, %v2678_v39  ;;  %v1301_v46 = vadd.f32 %v1300_v36, %v1147_v34 }
 0x224   : > { %v1415_v23 = vmul.f32 1.442695, %v1396_v32  ;;  %v1934_v51 = vpop.eup %1933 }
 0x225   : > { %v1347_v45 = vpop.f32.mrf.mxu2  ;;  %v1791_v43 = vadd.f32 -1.0, %v1934_v51 }
 0x226   : > { %1935 = vpow2.f32 %v1415_v23  ;;  %v1348_v55 = vadd.f32 %v1347_v45, %v1299_v63 }
 0x227   : > { %v1459_v31 = vmul.f32 0.1, %v1791_v43 }
 0x228   : > { %v1381_v41 = vmin.f32 %v1348_v55, 0.0  ;;  %vm1477_vm6 = vcmp.gt.f32.partialorder %v1348_v55, 0.0 }
 0x229   : > { %v1303_v13 = vpop.f32.mrf.mxu1  ;;  %v2686_v17 = vsel %vm1475_vm4, %v1343_v24, %v1459_v31 }
 0x22a   : > { %v1397_v19 = vmul.f32 %v1381_v41, %v2318_v7  ;;  %v1304_v59 = vadd.f32 %v1303_v13, %v2665_v57 }
 0x22c   : > { %v1936_v54 = vpop.eup %1935  ;;  %v1417_v12 = vmul.f32 1.442695, %v1397_v19 }
 0x22d   : > { %v1349_v16 = vpop.f32.mrf.mxu2  ;;  %v1792_v30 = vadd.f32 -1.0, %v1936_v54 }
 0x22e   : > { %v1350_v21 = vadd.f32 %v1349_v16, %v1301_v46  ;;  %1937 = vpow2.f32 %v1417_v12 }
 0x22f   : > { %v1460_v0 = vmul.f32 0.1, %v1792_v30 }
 0x230   : > { %v1382_v48 = vmin.f32 %v1350_v21, 0.0  ;;  %vm1478_vm7 = vcmp.gt.f32.partialorder %v1350_v21, 0.0 }
 0x231   : > { %v1305_v1 = vpop.f32.mrf.mxu1  ;;  %v2688_v18 = vsel %vm1476_vm5, %v1345_v62, %v1460_v0 }
 0x232   : > { %v1398_v58 = vmul.f32 %v1382_v48, %v2318_v7  ;;  %v1506_v34 = vpack.c.bf16 %v2688_v18, %v2686_v17  ;;  %v1306_v57 = vadd.f32 %v1305_v1, %v2669_v5  ;;  %v1518_v17 = vpop.permute.xlu0 %1517 }
 0x234   : > { %v1419_v3 = vmul.f32 1.442695, %v1398_v58  ;;  %v1938_v50 = vpop.eup %1937 }
 0x235   : > { %v1352_v49 = vpop.f32.mrf.mxu2  ;;  %v1793_v9 = vadd.f32 -1.0, %v1938_v50 }
 0x236   : > { %1939 = vpow2.f32 %v1419_v3  ;;  %v1353_v47 = vadd.f32 %v1352_v49, %v1304_v59 }
 0x237   : > { %v1461_v52 = vmul.f32 0.1, %v1793_v9 }
 0x238   : > { %v1383_v6 = vmin.f32 %v1353_v47, 0.0  ;;  %vm1479_vm8 = vcmp.gt.f32.partialorder %v1353_v47, 0.0 }
 0x239   : > { %v1308_v44 = vpop.f32.mrf.mxu1  ;;  %v2704_v4 = vsel %vm1477_vm6, %v1348_v55, %v1461_v52 }
 0x23a   : > { %v1399_v53 = vmul.f32 %v1383_v6, %v2318_v7  ;;  %v1309_v42 = vadd.f32 %v1308_v44, %v2663_v28 }
 0x23c   : > { %v1940_v60 = vpop.eup %1939  ;;  %v1421_v24 = vmul.f32 1.442695, %v1399_v53 }
 0x23d   : > { %v1354_v33 = vpop.f32.mrf.mxu2  ;;  %v1794_v10 = vadd.f32 -1.0, %v1940_v60 }
 0x23e   : > { %v1355_v27 = vadd.f32 %v1354_v33, %v1306_v57  ;;  %1941 = vpow2.f32 %v1421_v24 }
 0x23f   : > { %v1462_v37 = vmul.f32 0.1, %v1794_v10 }
 0x240   : > { %v1384_v26 = vmin.f32 %v1355_v27, 0.0  ;;  %vm1480_vm9 = vcmp.gt.f32.partialorder %v1355_v27, 0.0 }
 0x241   : > { %v1310_v40 = vpop.f32.mrf.mxu1  ;;  %v2706_v35 = vsel %vm1478_vm7, %v1350_v21, %v1462_v37 }
 0x242   : > { %v1400_v14 = vmul.f32 %v1384_v26, %v2318_v7  ;;  %v1507_v5 = vpack.c.bf16 %v2706_v35, %v2704_v4  ;;  %v1862_v4 = vld [vmem:[%s314_s9] ss:$0 sm:$0xff] }
 0x244   : > { %v1423_v62 = vmul.f32 1.442695, %v1400_v14  ;;  %v1942_v8 = vpop.eup %1941 }
 0x245   : > { %v1357_v29 = vpop.f32.mrf.mxu2  ;;  %v1795_v63 = vadd.f32 -1.0, %v1942_v8 }
 0x246   : > { %1943 = vpow2.f32 %v1423_v62  ;;  %v2712_v36 = vadd.f32 %v1357_v29, %v1309_v42 }
 0x247   : > { %v1463_v55 = vmul.f32 0.1, %v1795_v63 }
 0x248   : > { %v1385_v14 = vmin.f32 %v2712_v36, 0.0  ;;  %vm1481_vm1 = vcmp.gt.f32.partialorder %v2712_v36, 0.0 }
 0x249   : > { %v1313_v32 = vpop.f32.mrf.mxu1  ;;  %v2714_v43 = vsel %vm1479_vm8, %v1353_v47, %v1463_v55 }
 0x24a   : > { %v1314_v47 = vadd.f32 %v1313_v32, %v2671_v11  ;;  %v1401_v63 = vmul.f32 %v1385_v14, %v2318_v7 }
 0x24c   : > { %v1944_v23 = vpop.eup %1943 }
 0x24d   : > { %v1359_v45 = vpop.f32.mrf.mxu2  ;;  %v1796_v51 = vadd.f32 -1.0, %v1944_v23 }
 0x24f   : > { %v1464_v41 = vmul.f32 0.1, %v1796_v51 }
 0x251   : > { %v1315_v13 = vpop.f32.mrf.mxu1  ;;  %v2716_v19 = vsel %vm1480_vm9, %v1355_v27, %v1464_v41 }
 0x252   : > { %v1508_v28 = vpack.c.bf16 %v2716_v19, %v2714_v43  ;;  %v1316_v58 = vadd.f32 %v1315_v13, %v2649_v2  ;;  %v1425_v13 = vmul.f32 1.442695, %v1401_v63 }
 0x255   : > { %v1362_v54 = vpop.f32.mrf.mxu2 }
 0x256   : > { %v2733_v9 = vadd.f32 %v1362_v54, %v1314_v47 }
 0x258   : > { %v1387_v11 = vmin.f32 %v2733_v9, 0.0  ;;  %vm1483_vm15 = vcmp.gt.f32.partialorder %v2733_v9, 0.0 }
 0x259   : > { %v1318_v46 = vpop.f32.mrf.mxu1 }
 0x25a   : > { %v1319_v48 = vadd.f32 %v1318_v46, %v2639_v38  ;;  %v1403_v42 = vmul.f32 %v1387_v11, %v2318_v7 }
 0x25c   : > { %v1429_v23 = vmul.f32 1.442695, %v1403_v42 }
 0x25d   : > { %v1364_v12 = vpop.f32.mrf.mxu2 }
 0x25e   : > { %v2728_v49 = vadd.f32 %v1364_v12, %v1316_v58 }
 0x260   : > { %v1388_v2 = vmin.f32 %v2728_v49, 0.0  ;;  %vm1484_vm14 = vcmp.gt.f32.partialorder %v2728_v49, 0.0 }
 0x261   : > { %v1320_v16 = vpop.f32.mrf.mxu1 }
 0x262   : > { %v1321_v0 = vadd.f32 %v1320_v16, %v2647_v25  ;;  %v1311_v25 = vadd.f32 %v1310_v40, %v2673_v56  ;;  %v1404_v52 = vmul.f32 %v1388_v2, %v2318_v7 }
 0x264   : > { %v2737_v57 = vadd.f32 %v1359_v45, %v1311_v25  ;;  %v1431_v8 = vmul.f32 1.442695, %v1404_v52 }
 0x265   : > { %v1367_v30 = vpop.f32.mrf.mxu2 }
 0x266   : > { %v2725_v59 = vadd.f32 %v1367_v30, %v1319_v48  ;;  %v1386_v37 = vmin.f32 %v2737_v57, 0.0  ;;  %vm1482_vm0 = vcmp.gt.f32.partialorder %v2737_v57, 0.0 }
 0x268   : > { %v1389_v38 = vmin.f32 %v2725_v59, 0.0  ;;  %v1402_v32 = vmul.f32 %v1386_v37, %v2318_v7  ;;  %vm1485_vm13 = vcmp.gt.f32.partialorder %v2725_v59, 0.0 }
 0x269   : > { %v1323_v21 = vpop.f32.mrf.mxu1 }
 0x26a   : > { %v1324_v3 = vadd.f32 %v1323_v21, %v2637_v61  ;;  %v1405_v33 = vmul.f32 %v1389_v38, %v2318_v7  ;;  %v1427_v55 = vmul.f32 1.442695, %v1402_v32 }
 0x26c   : > { %v1433_v62 = vmul.f32 1.442695, %v1405_v33 }
 0x26d   : > { %v1369_v31 = vpop.f32.mrf.mxu2 }
 0x26e   : > { %v2722_v1 = vadd.f32 %v1369_v31, %v1321_v0 }
 0x270   : > { %v1390_v6 = vmin.f32 %v2722_v1, 0.0  ;;  %vm1486_vm12 = vcmp.gt.f32.partialorder %v2722_v1, 0.0 }
 0x271   : > { %v1325_v60 = vpop.f32.mrf.mxu1 }
 0x272   : > { %v1406_v61 = vmul.f32 %v1390_v6, %v2318_v7  ;;  %v1326_v56 = vadd.f32 %v1325_v60, %v2667_v15 }
 0x274   : > { %v1435_v26 = vmul.f32 1.442695, %v1406_v61 }
 0x275   : > { %v1372_v50 = vpop.f32.mrf.mxu2 }
 0x276   : > { %v1373_v44 = vadd.f32 %v1372_v50, %v1324_v3 }
 0x278   : > { %v1391_v53 = vmin.f32 %v1373_v44, 0.0  ;;  %vm1487_vm10 = vcmp.gt.f32.partialorder %v1373_v44, 0.0 }
 0x27a   : > { %v1407_v24 = vmul.f32 %v1391_v53, %v2318_v7 }
 0x27c   : > { %v1437_v10 = vmul.f32 1.442695, %v1407_v24 }
 0x27d   : > { %v1374_v27 = vpop.f32.mrf.mxu2 }
 0x27e   : > { %v1375_v40 = vadd.f32 %v1374_v27, %v1326_v56  ;;  %1945 = vpow2.f32 %v1437_v10 }
 0x27f   : > { %1947 = vpow2.f32 %v1435_v26 }
 0x280   : > { %v1392_v29 = vmin.f32 %v1375_v40, 0.0  ;;  %1949 = vpow2.f32 %v1433_v62  ;;  %vm1488_vm11 = vcmp.gt.f32.partialorder %v1375_v40, 0.0 }
 0x281   : > { %1951 = vpow2.f32 %v1431_v8 }
 0x282   : > { %v1408_v15 = vmul.f32 %v1392_v29, %v2318_v7 }
 0x284   : > { %v1439_v45 = vmul.f32 1.442695, %v1408_v15  ;;  %v1946_v51 = vpop.eup %1945 }
 0x285   : > { %v1948_v41 = vpop.eup %1947  ;;  %v1803_v54 = vadd.f32 -1.0, %v1946_v51 }
 0x286   : > { %1953 = vpow2.f32 %v1439_v45  ;;  %v1950_v46 = vpop.eup %1949  ;;  %v1802_v16 = vadd.f32 -1.0, %v1948_v41 }
 0x287   : > { %1955 = vpow2.f32 %v1429_v23  ;;  %v1952_v12 = vpop.eup %1951  ;;  %v1471_v21 = vmul.f32 0.1, %v1803_v54  ;;  %v1801_v7 = vadd.f32 -1.0, %v1950_v46 }
 0x288   : > { %1957 = vpow2.f32 %v1427_v55  ;;  %v1470_v58 = vmul.f32 0.1, %v1802_v16  ;;  %v1800_v3 = vadd.f32 -1.0, %v1952_v12 }
 0x289   : > { %1959 = vpow2.f32 %v1425_v13  ;;  %v1503_v47 = vsel %vm1487_vm10, %v1373_v44, %v1471_v21  ;;  %v1469_v25 = vmul.f32 0.1, %v1801_v7 }
 0x28a   : > { %v1502_v60 = vsel %vm1486_vm12, %v2722_v1, %v1470_v58  ;;  %v1468_v61 = vmul.f32 0.1, %v1800_v3 }
 0x28b   : > { %v1501_v11 = vsel %vm1485_vm13, %v2725_v59, %v1469_v25 }
 0x28c   : > { %v1954_v30 = vpop.eup %1953  ;;  %v1511_v10 = vpack.c.bf16 %v1502_v60, %v1501_v11  ;;  %v1500_v44 = vsel %vm1484_vm14, %v2728_v49, %v1468_v61  ;;  %v1534_v49 = vlaneseq }
 0x28d   : > { %v1804_v31 = vadd.f32 -1.0, %v1954_v30  ;;  %v1956_v0 = vpop.eup %1955 }
 0x28e   : > { %v1958_v50 = vpop.eup %1957  ;;  %v1799_v38 = vadd.f32 -1.0, %v1956_v0  ;;  %v1535_v43 = vshrl.u32 %v1534_v49, 7 }
 0x28f   : > { %v1472_v48 = vmul.f32 0.1, %v1804_v31  ;;  %v1960_v53 = vpop.eup %1959  ;;  %v1798_v24 = vadd.f32 -1.0, %v1958_v50 }
 0x290   : > { %v1467_v33 = vmul.f32 0.1, %v1799_v38  ;;  %v1797_v56 = vadd.f32 -1.0, %v1960_v53  ;;  %vm1537_vm2 = vcmp.eq.s32.totalorder %v1535_v43, %v1862_v4 }
 0x291   : > { %v1504_v6 = vsel %vm1488_vm11, %v1375_v40, %v1472_v48  ;;  %v1466_v52 = vmul.f32 0.1, %v1798_v24 }
 0x292   : > { %v1512_v2 = vpack.c.bf16 %v1504_v6, %v1503_v47  ;;  %v1499_v1 = vsel %vm1483_vm15, %v2733_v9, %v1467_v33  ;;  %v1465_v27 = vmul.f32 0.1, %v1797_v56 }
 0x293   : > { %v1510_v37 = vpack.c.bf16 %v1500_v44, %v1499_v1  ;;  %v1498_v59 = vsel %vm1482_vm0, %v2737_v57, %v1466_v52 }
 0x294   : > { %1520 = vmatpush.bf16.msrb.mxu1 %v1512_v2  ;;  %v1497_v26 = vsel %vm1481_vm1, %v2712_v36, %v1465_v27  ;;  %v1513_v36 = vld [vmem:[%s2796_s6] sm:$0x3] }
 0x295   : > { %v1509_v40 = vpack.c.bf16 %v1498_v59, %v1497_v26 }
 0x298   : > { %1521 = vmatpush.bf16.msrb.mxu1 %v1511_v10 }
 0x29c   : > { %1522 = vmatpush.bf16.msrb.mxu1 %v1510_v37 }
 0x2a0   : > { %1523 = vmatpush.bf16.msrb.mxu1 %v1509_v40 }
 0x2a4   : > { %1524 = vmatpush.bf16.msrb.mxu1 %v1508_v28 }
 0x2a8   : > { %1525 = vmatpush.bf16.msrb.mxu1 %v1507_v5 }
 0x2ac   : > { %1526 = vmatpush.bf16.msrb.mxu1 %v1506_v34  ;;  %v1971_v34 = vmov 0.0  }
 0x2ad   : > { %v1805_v35 = vsel %vm1537_vm2, 1.0, %v1971_v34 }
 0x2b0   : > { %1527 = vmatpush.bf16.msrb.mxu1 %v1505_v20 }
 0x2b3   : > { %1528 = vmatmul.bf16.vlgmr.msrb.gmra.mxu1 %v1513_v36 }
 0x330   : > { %v1529_v18 = vpop.f32.mrf.mxu1 }
 0x331   : > { %v1530_v39 = vadd.f32 %v1529_v18, %v1518_v17 }
 0x333   : > { %v1540_v22 = vmul.f32 %v1805_v35, %v1530_v39 }
 0x335   : > { %v1542_v20 = vsel %vm1541_vm3, %v1540_v22, 0.0 }
 0x336   : > { %v1543_v5 = vrot.slane %v1542_v20, 4 }
 0x338   : > { %v1544_v19 = vadd.f32 %v1543_v5, %v1542_v20  ;;  %v1531_v28 = vpop.f32.mrf.mxu1 }
 0x33a   : > { %v1545_v9 = vrot.slane %v1544_v19, 2 }
 0x33c   : > { %v1546_v57 = vadd.f32 %v1545_v9, %v1544_v19 }
 0x33e   : > { %v1547_v14 = vrot.slane %v1546_v57, 1 }
 0x340   : > { %v1548_v42 = vadd.f32 %v1547_v14, %v1546_v57 }
 0x342   : > { %1549 = vst [vmem:[%s317_s17] sm:$0x1] %v1548_v42 }
 0x343 PF: > { %s18_s27 = sadd.s32 1, %s1967_s27  }
 0x344   : > { %p15_p5 = scmp.ge.s32.totalorder %s18_s27, 4  }
 0x346   :  { %17 = sbr.rel (!%p15_p5) target bundleno = 1 (0x1), region = 85 }

</bundles_post_ra>
